<compile_context>
chip_gen: v7x
topology: tpu7x:2x2x1
jax: 0.10.0
libtpu: 0.0.40
codegen_flags: <defaults>
</compile_context>

<pallas_src>
import math

import jax
import jax.numpy as jnp
from jax.experimental import pallas as pl
from jax.experimental.pallas import tpu as pltpu

# ---------------- configuration (scaled-down but structurally identical) -------------------
B = 2              # batch
C = 3              # image channels
IMG = 32           # image H = W
P = 16             # patch size  -> N = 4 patches, S = 5 tokens (CLS + patches)
N = (IMG // P) ** 2
S = N + 1
S_PAD = 8          # per-image token rows padded to one full sublane; pad keys masked
T = B * S_PAD      # all images folded into one 16-row activation block
D = 64             # backbone hidden size (stand-in for 768)
HEADS = 4
DH = D // HEADS
FF = 4 * D         # MLP intermediate
LAYERS = 2         # encoder layers (stand-in for 12)
HID = 32           # head hidden_size (stand-in for 1024)
NUM_CLASSES = 8    # stand-in for 200
OUT_LANES = 128    # lane-dense head output slab: [cls logits | bbox | zero pad]
LN_EPS = 1e-12     # HF ViT layer_norm_eps
NEG_SLOPE = 0.01   # torch.nn.LeakyReLU default
CPP = C * P * P    # flattened patch length (768)


# ----------------------------------- in-kernel helpers -------------------------------------
def _layer_norm(x, g, b):
    mean = jnp.mean(x, axis=-1, keepdims=True)
    var = jnp.mean((x - mean) ** 2, axis=-1, keepdims=True)
    return (x - mean) * jax.lax.rsqrt(var + LN_EPS) * g + b


def _erf(x):
    # Abramowitz & Stegun 7.1.26, |err| < 1.5e-7 (exp runs on the EUP slot).
    a1, a2, a3, a4, a5 = 0.254829592, -0.284496736, 1.421413741, -1.453152027, 1.061405429
    pc = 0.3275911
    ax = jnp.abs(x)
    t = 1.0 / (1.0 + pc * ax)
    poly = ((((a5 * t + a4) * t + a3) * t + a2) * t + a1) * t
    y = 1.0 - poly * jnp.exp(-ax * ax)
    return jnp.where(x >= 0, y, -y)


def _gelu_exact(x):
    return 0.5 * x * (1.0 + _erf(x * (1.0 / math.sqrt(2.0))))


def _leaky_relu(x):
    return jnp.where(x > 0, x, NEG_SLOPE * x)


def _sigmoid(x):
    return 1.0 / (1.0 + jnp.exp(-x))


# ----------------------------------- fused ViT kernel --------------------------------------
def _vit_kernel(xp_ref, pw_ref, add_ref, bias_ref,
                ln1g_ref, ln1b_ref, qkvw_ref, qkvb_ref, ow_ref, ob_ref,
                ln2g_ref, ln2b_ref, f1w_ref, f1b_ref, f2w_ref, f2b_ref,
                lng_ref, lnb_ref,
                hw0_ref, hb0_ref, hw1_ref, hb1_ref, hw2_ref, hb2_ref, hw3_ref, hb3_ref,
                out_ref, h_acc):
    """grid=(LAYERS,). One step = one encoder layer; embed at l==0, heads at l==LAYERS-1."""
    l = pl.program_id(0)

    # --- patch / CLS / positional embedding (first layer step only) ------------------------
    @pl.when(l == 0)
    def _():
        # Zero CLS/pad rows ride along in the matmul: 16 rows cost the same MXU passes as 8.
        tok = jnp.dot(xp_ref[...], pw_ref[...], preferred_element_type=jnp.float32)
        h_acc[...] = tok + add_ref[...]

    h = h_acc[...]                                                   # (T, D) f32 residual stream

    # --- attention branch -------------------------------------------------------------------
    xn = _layer_norm(h, ln1g_ref[...], ln1b_ref[...])
    qkv = jnp.dot(xn.astype(jnp.bfloat16), qkvw_ref[...],
                  preferred_element_type=jnp.float32) + qkvb_ref[...]
    qkv = qkv.astype(jnp.bfloat16)                                   # (T, 3D)

    scale = 1.0 / math.sqrt(DH)
    attn = jnp.zeros((T, D), jnp.float32)
    # TODO(synk): at real DH=64 batch heads through one einsum instead of the static loop.
    for hd in range(HEADS):                                          # static unroll
        qh = qkv[:, hd * DH:(hd + 1) * DH]
        kh = qkv[:, D + hd * DH:D + (hd + 1) * DH]
        vh = qkv[:, 2 * D + hd * DH:2 * D + (hd + 1) * DH]
        s = jax.lax.dot_general(qh, kh, (((1,), (1,)), ((), ())),
                                preferred_element_type=jnp.float32) * scale
        s = s + bias_ref[...]                # block-diagonal image mask + padded-key mask
        s = s - jnp.max(s, axis=-1, keepdims=True)
        p = jnp.exp(s)
        p = p * pl.reciprocal(jnp.sum(p, axis=-1, keepdims=True), approx=True)
        ctx = jnp.dot(p.astype(jnp.bfloat16), vh, preferred_element_type=jnp.float32)
        # Fold the head merge into the output projection (no lane concat of head outputs).
        attn = attn + jnp.dot(ctx.astype(jnp.bfloat16), ow_ref[hd * DH:(hd + 1) * DH, :],
                              preferred_element_type=jnp.float32)
    h1 = h + attn + ob_ref[...]

    # --- MLP branch ---------------------------------------------------------------------------
    xn2 = _layer_norm(h1, ln2g_ref[...], ln2b_ref[...])
    ff = jnp.dot(xn2.astype(jnp.bfloat16), f1w_ref[...],
                 preferred_element_type=jnp.float32) + f1b_ref[...]
    ff = _gelu_exact(ff)
    ff = jnp.dot(ff.astype(jnp.bfloat16), f2w_ref[...],
                 preferred_element_type=jnp.float32) + f2b_ref[...]
    h2 = h1 + ff
    h_acc[...] = h2

    # --- final LN + fused cls/bbox heads (last layer step only) ------------------------------
    @pl.when(l == LAYERS - 1)
    def _():
        # CLS rows (rows b*S_PAD) read straight from the VMEM-resident activations.
        feat = jnp.concatenate([h2[b * S_PAD:b * S_PAD + 1, :] for b in range(B)], axis=0)
        feat = _layer_norm(feat, lng_ref[...], lnb_ref[...])        # (B, D)
        y = feat
        # Both heads run side-by-side in lanes via block-diagonal packed weights.
        for w_ref, b_ref in ((hw0_ref, hb0_ref), (hw1_ref, hb1_ref), (hw2_ref, hb2_ref)):
            y = jnp.dot(y.astype(jnp.bfloat16), w_ref[...],
                        preferred_element_type=jnp.float32) + b_ref[...]
            y = _leaky_relu(y)                # Dropout(p=0.05) is identity at inference
        y = jnp.dot(y.astype(jnp.bfloat16), hw3_ref[...],
                    preferred_element_type=jnp.float32) + hb3_ref[...]   # (B, 128)
        lane = jax.lax.broadcasted_iota(jnp.int32, (B, OUT_LANES), 1)
        is_bbox = (lane >= NUM_CLASSES) & (lane < NUM_CLASSES + 4)
        y = jnp.where(is_bbox, _sigmoid(y), y)
        out_ref[...] = y.astype(out_ref.dtype)


# ----------------------------------- pallas_call wrapper -----------------------------------
def _resident(shape):
    zeros = (0,) * len(shape)
    return pl.BlockSpec(tuple(shape), lambda l, _z=zeros: _z)


def _stacked(inner_shape):
    zeros = (0,) * len(inner_shape)
    return pl.BlockSpec((None,) + tuple(inner_shape), lambda l, _z=zeros: (l,) + _z)


def run_vit(xp_pad, p):
    kernel_inputs = [
        xp_pad, p["patch_w"], p["embed_add"], p["attn_bias"],
        p["ln1_g"], p["ln1_b"], p["qkv_w"], p["qkv_b"], p["o_w"], p["o_b"],
        p["ln2_g"], p["ln2_b"], p["fc1_w"], p["fc1_b"], p["fc2_w"], p["fc2_b"],
        p["ln_g"], p["ln_b"],
        p["head_w0"], p["head_b0"], p["head_w1"], p["head_b1"],
        p["head_w2"], p["head_b2"], p["head_w3"], p["head_b3"],
    ]
    in_specs = []
    for i, arr in enumerate(kernel_inputs):
        if 4 <= i < 16:                      # per-layer weights, stacked along LAYERS
            in_specs.append(_stacked(arr.shape[1:]))
        else:                                # resident for the whole grid
            in_specs.append(_resident(arr.shape))

    mm = lambda m, k, n: 2 * m * k * n
    layer_flops = (mm(T, D, 3 * D)
                   + HEADS * (mm(T, DH, T) + mm(T, T, DH) + mm(T, DH, D))
                   + mm(T, D, FF) + mm(T, FF, D))
    head_flops = mm(B, D, 2 * HID) + mm(B, 2 * HID, HID) + mm(B, HID, HID // 2) \
        + mm(B, HID // 2, OUT_LANES)
    flops = mm(T, CPP, D) + LAYERS * layer_flops + head_flops
    transcendentals = LAYERS * (HEADS * T * T + T * FF) + B * OUT_LANES
    bytes_accessed = sum(a.size * a.dtype.itemsize for a in kernel_inputs) \
        + B * OUT_LANES * 4

    return pl.pallas_call(
        _vit_kernel,
        out_shape=jax.ShapeDtypeStruct((B, OUT_LANES), jnp.float32),
        grid=(LAYERS,),
        in_specs=in_specs,
        out_specs=pl.BlockSpec((B, OUT_LANES), lambda l: (0, 0)),
        scratch_shapes=[pltpu.VMEM((T, D), jnp.float32)],
        compiler_params=pltpu.CompilerParams(
            dimension_semantics=("arbitrary",),
            vmem_limit_bytes=32 * 1024 * 1024),
        cost_estimate=pl.CostEstimate(flops=int(flops),
                                      transcendentals=int(transcendentals),
                                      bytes_accessed=int(bytes_accessed)),
    )(*kernel_inputs)


# ------------------------------- parameter initialization ----------------------------------
def init_params(key):
    keys = iter(jax.random.split(key, 64))

    def nrm(shape, std=0.02):
        return std * jax.random.normal(next(keys), shape, jnp.float32)

    def xavier(fan_in, fan_out):
        limit = math.sqrt(6.0 / (fan_in + fan_out))
        return jax.random.uniform(next(keys), (fan_in, fan_out), jnp.float32, -limit, limit)

    p = {}
    # patch embedding (Conv2d(C, D, P, P) as a matmul over flattened (C, ph, pw) patches)
    p["patch_w"] = nrm((CPP, D)).astype(jnp.bfloat16)
    cls_tok = nrm((1, D))
    pos = nrm((S, D))
    patch_b = jnp.zeros((1, D), jnp.float32)
    per_img_add = jnp.concatenate(
        [cls_tok + pos[0:1, :], patch_b + pos[1:S, :],
         jnp.zeros((S_PAD - S, D), jnp.float32)], axis=0)            # (S_PAD, D)
    p["embed_add"] = jnp.tile(per_img_add, (B, 1))                   # (T, D)

    # additive attention bias: same-image block diagonal AND key token < S (pad keys masked)
    row = jnp.arange(T)[:, None]
    col = jnp.arange(T)[None, :]
    valid = (row // S_PAD == col // S_PAD) & ((col % S_PAD) < S)
    p["attn_bias"] = jnp.where(valid, 0.0, -1e30).astype(jnp.float32)

    def stack(make):
        return jnp.stack([make() for _ in range(LAYERS)], axis=0)

    p["ln1_g"] = jnp.ones((LAYERS, 1, D), jnp.float32)
    p["ln1_b"] = jnp.zeros((LAYERS, 1, D), jnp.float32)
    p["qkv_w"] = stack(lambda: jnp.concatenate([nrm((D, D)) for _ in range(3)],
                                               axis=1)).astype(jnp.bfloat16)   # (L, D, 3D)
    p["qkv_b"] = jnp.zeros((LAYERS, 1, 3 * D), jnp.float32)
    p["o_w"] = stack(lambda: nrm((D, D))).astype(jnp.bfloat16)
    p["o_b"] = jnp.zeros((LAYERS, 1, D), jnp.float32)
    p["ln2_g"] = jnp.ones((LAYERS, 1, D), jnp.float32)
    p["ln2_b"] = jnp.zeros((LAYERS, 1, D), jnp.float32)
    p["fc1_w"] = stack(lambda: nrm((D, FF))).astype(jnp.bfloat16)
    p["fc1_b"] = jnp.zeros((LAYERS, 1, FF), jnp.float32)
    p["fc2_w"] = stack(lambda: nrm((FF, D))).astype(jnp.bfloat16)
    p["fc2_b"] = jnp.zeros((LAYERS, 1, D), jnp.float32)

    p["ln_g"] = jnp.ones((1, D), jnp.float32)
    p["ln_b"] = jnp.zeros((1, D), jnp.float32)

    # heads: Linear->LeakyReLU x3 -> Linear (+Sigmoid for bbox); xavier_uniform_ / zeros_.
    # Both heads are packed lane-parallel via block-diagonal weights.
    cls_dims = [D, HID, HID // 2, HID // 4, NUM_CLASSES]
    box_dims = [D, HID, HID // 2, HID // 4, 4]
    cls_w = [xavier(cls_dims[i], cls_dims[i + 1]) for i in range(4)]
    box_w = [xavier(box_dims[i], box_dims[i + 1]) for i in range(4)]

    def block_diag(a, b_):
        z_tr = jnp.zeros((a.shape[0], b_.shape[1]), jnp.float32)
        z_bl = jnp.zeros((b_.shape[0], a.shape[1]), jnp.float32)
        return jnp.concatenate([jnp.concatenate([a, z_tr], axis=1),
                                jnp.concatenate([z_bl, b_], axis=1)], axis=0)

    p["head_w0"] = jnp.concatenate([cls_w[0], box_w[0]], axis=1).astype(jnp.bfloat16)
    p["head_b0"] = jnp.zeros((1, 2 * HID), jnp.float32)
    p["head_w1"] = block_diag(cls_w[1], box_w[1]).astype(jnp.bfloat16)
    p["head_b1"] = jnp.zeros((1, HID), jnp.float32)
    p["head_w2"] = block_diag(cls_w[2], box_w[2]).astype(jnp.bfloat16)
    p["head_b2"] = jnp.zeros((1, HID // 2), jnp.float32)
    w3 = jnp.zeros((HID // 2, OUT_LANES), jnp.float32)
    w3 = w3.at[0:HID // 4, 0:NUM_CLASSES].set(cls_w[3])
    w3 = w3.at[HID // 4:HID // 2, NUM_CLASSES:NUM_CLASSES + 4].set(box_w[3])
    p["head_w3"] = w3.astype(jnp.bfloat16)
    p["head_b3"] = jnp.zeros((1, OUT_LANES), jnp.float32)
    return p


# ------------------------------------- forward pass ----------------------------------------
@jax.jit
def vit_forward(x, params):
    """x: (B, C, IMG, IMG) NCHW float32 -> (bbox (B,4), cls_logits (B,NUM_CLASSES))."""
    # patchify: NCHW -> (B, N, C*P*P) with (C, ph, pw) flattening order (matches Conv2d weight)
    # TODO(synk): the 6-D patchify transpose stays in XLA; a gather-style index_map could fold it in.
    xp = x.reshape(B, C, IMG // P, P, IMG // P, P)
    xp = xp.transpose(0, 2, 4, 1, 3, 5).reshape(B, N, CPP)
    # zero rows for the CLS slot (row 0) and sublane padding rows S..S_PAD-1 per image
    xp_pad = jnp.pad(xp, ((0, 0), (1, S_PAD - S), (0, 0))).reshape(T, CPP).astype(jnp.bfloat16)

    slab = run_vit(xp_pad, params)                                   # (B, 128) lane-dense slab
    cls_logits = slab[:, :NUM_CLASSES]
    bbox = slab[:, NUM_CLASSES:NUM_CLASSES + 4]
    return bbox, cls_logits


# ----------------------------------------- main ---------------------------------------------
if __name__ == "__main__":
    key = jax.random.PRNGKey(0)
    k_param, k_x = jax.random.split(key)
    params = init_params(k_param)
    x = jax.random.normal(k_x, (B, C, IMG, IMG), jnp.float32)

    bbox, cls_logits = vit_forward(x, params)
    jax.block_until_ready((bbox, cls_logits))

    assert bbox.shape == (B, 4) and cls_logits.shape == (B, NUM_CLASSES)
    assert bool(jnp.all(jnp.isfinite(bbox))) and bool(jnp.all(jnp.isfinite(cls_logits)))
    assert bool(jnp.all((bbox >= 0.0) & (bbox <= 1.0)))  # sigmoid output range
    print("KERNEL_OK")
</pallas_src>

<mosaic_0001>
module attributes {stable_mosaic.version = 11 : i64} {
  func.func @_vit_kernel(%arg0: i32, %arg1: memref<16x768xbf16, #tpu.memory_space<vmem>>, %arg2: memref<768x64xbf16, #tpu.memory_space<vmem>>, %arg3: memref<16x64xf32, #tpu.memory_space<vmem>>, %arg4: memref<16x16xf32, #tpu.memory_space<vmem>>, %arg5: memref<1x1x64xf32, #tpu.memory_space<vmem>>, %arg6: memref<1x1x64xf32, #tpu.memory_space<vmem>>, %arg7: memref<1x64x192xbf16, #tpu.memory_space<vmem>>, %arg8: memref<1x1x192xf32, #tpu.memory_space<vmem>>, %arg9: memref<1x64x64xbf16, #tpu.memory_space<vmem>>, %arg10: memref<1x1x64xf32, #tpu.memory_space<vmem>>, %arg11: memref<1x1x64xf32, #tpu.memory_space<vmem>>, %arg12: memref<1x1x64xf32, #tpu.memory_space<vmem>>, %arg13: memref<1x64x256xbf16, #tpu.memory_space<vmem>>, %arg14: memref<1x1x256xf32, #tpu.memory_space<vmem>>, %arg15: memref<1x256x64xbf16, #tpu.memory_space<vmem>>, %arg16: memref<1x1x64xf32, #tpu.memory_space<vmem>>, %arg17: memref<1x64xf32, #tpu.memory_space<vmem>>, %arg18: memref<1x64xf32, #tpu.memory_space<vmem>>, %arg19: memref<64x64xbf16, #tpu.memory_space<vmem>>, %arg20: memref<1x64xf32, #tpu.memory_space<vmem>>, %arg21: memref<64x32xbf16, #tpu.memory_space<vmem>>, %arg22: memref<1x32xf32, #tpu.memory_space<vmem>>, %arg23: memref<32x16xbf16, #tpu.memory_space<vmem>>, %arg24: memref<1x16xf32, #tpu.memory_space<vmem>>, %arg25: memref<16x128xbf16, #tpu.memory_space<vmem>>, %arg26: memref<1x128xf32, #tpu.memory_space<vmem>>, %arg27: memref<2x128xf32, #tpu.memory_space<vmem>>, %arg28: memref<16x64xf32, #tpu.memory_space<vmem>>) attributes {dimension_semantics = [#tpu.dimension_semantics<arbitrary>], iteration_bounds = array<i64: 2>, scalar_prefetch = 0 : i64, scratch_operands = 1 : i64, tpu.core_type = #tpu.core_type<tc>, window_params = [{pipeline_mode = #tpu.pipeline_mode<synchronous>, transform_indices = @transform_0, window_bounds = array<i64: 16, 768>}, {pipeline_mode = #tpu.pipeline_mode<synchronous>, transform_indices = @transform_1, window_bounds = array<i64: 768, 64>}, {pipeline_mode = #tpu.pipeline_mode<synchronous>, transform_indices = @transform_2, window_bounds = array<i64: 16, 64>}, {pipeline_mode = #tpu.pipeline_mode<synchronous>, transform_indices = @transform_3, window_bounds = array<i64: 16, 16>}, {transform_indices = @transform_4, window_bounds = array<i64: 1, 1, 64>}, {transform_indices = @transform_5, window_bounds = array<i64: 1, 1, 64>}, {transform_indices = @transform_6, window_bounds = array<i64: 1, 64, 192>}, {transform_indices = @transform_7, window_bounds = array<i64: 1, 1, 192>}, {transform_indices = @transform_8, window_bounds = array<i64: 1, 64, 64>}, {transform_indices = @transform_9, window_bounds = array<i64: 1, 1, 64>}, {transform_indices = @transform_10, window_bounds = array<i64: 1, 1, 64>}, {transform_indices = @transform_11, window_bounds = array<i64: 1, 1, 64>}, {transform_indices = @transform_12, window_bounds = array<i64: 1, 64, 256>}, {transform_indices = @transform_13, window_bounds = array<i64: 1, 1, 256>}, {transform_indices = @transform_14, window_bounds = array<i64: 1, 256, 64>}, {transform_indices = @transform_15, window_bounds = array<i64: 1, 1, 64>}, {pipeline_mode = #tpu.pipeline_mode<synchronous>, transform_indices = @transform_16, window_bounds = array<i64: 1, 64>}, {pipeline_mode = #tpu.pipeline_mode<synchronous>, transform_indices = @transform_17, window_bounds = array<i64: 1, 64>}, {pipeline_mode = #tpu.pipeline_mode<synchronous>, transform_indices = @transform_18, window_bounds = array<i64: 64, 64>}, {pipeline_mode = #tpu.pipeline_mode<synchronous>, transform_indices = @transform_19, window_bounds = array<i64: 1, 64>}, {pipeline_mode = #tpu.pipeline_mode<synchronous>, transform_indices = @transform_20, window_bounds = array<i64: 64, 32>}, {pipeline_mode = #tpu.pipeline_mode<synchronous>, transform_indices = @transform_21, window_bounds = array<i64: 1, 32>}, {pipeline_mode = #tpu.pipeline_mode<synchronous>, transform_indices = @transform_22, window_bounds = array<i64: 32, 16>}, {pipeline_mode = #tpu.pipeline_mode<synchronous>, transform_indices = @transform_23, window_bounds = array<i64: 1, 16>}, {pipeline_mode = #tpu.pipeline_mode<synchronous>, transform_indices = @transform_24, window_bounds = array<i64: 16, 128>}, {pipeline_mode = #tpu.pipeline_mode<synchronous>, transform_indices = @transform_25, window_bounds = array<i64: 1, 128>}, {pipeline_mode = #tpu.pipeline_mode<synchronous>, transform_indices = @transform_26, window_bounds = array<i64: 2, 128>}]} {
    %c0_i32 = arith.constant 0 : i32
    %0 = arith.cmpi eq, %arg0, %c0_i32 : i32
    %1 = arith.extui %0 : i1 to i32
    %c0_i32_0 = arith.constant 0 : i32
    %2 = arith.cmpi ne, %1, %c0_i32_0 : i32
    scf.if %2 {
      %c0_107 = arith.constant 0 : index
      %c0_108 = arith.constant 0 : index
      %232 = vector.load %arg1[%c0_107, %c0_108] : memref<16x768xbf16, #tpu.memory_space<vmem>>, vector<16x768xbf16>
      %c0_109 = arith.constant 0 : index
      %c0_110 = arith.constant 0 : index
      %233 = vector.load %arg2[%c0_109, %c0_110] : memref<768x64xbf16, #tpu.memory_space<vmem>>, vector<768x64xbf16>
      %cst_111 = arith.constant dense<0.000000e+00> : vector<16x64xf32>
      %234 = tpu.matmul %232, %233, %cst_111 {dimension_numbers = #tpu.dot_dimension_numbers<[1], [0], [0], [1], [0, 0, 1, 1], [], []>} : vector<16x768xbf16>, vector<768x64xbf16>, vector<16x64xf32> -> vector<16x64xf32>
      %c0_112 = arith.constant 0 : index
      %c0_113 = arith.constant 0 : index
      %235 = vector.load %arg3[%c0_112, %c0_113] : memref<16x64xf32, #tpu.memory_space<vmem>>, vector<16x64xf32>
      %236 = arith.addf %234, %235 : vector<16x64xf32>
      %c0_114 = arith.constant 0 : index
      %c0_115 = arith.constant 0 : index
      %237 = vector.load %arg28[%c0_114, %c0_115] : memref<16x64xf32, #tpu.memory_space<vmem>>, vector<16x64xf32>
      tpu.vector_store %arg28[%c0_114, %c0_115], %236 {strides = array<i32>} : memref<16x64xf32, #tpu.memory_space<vmem>>, vector<16x64xf32>,
    } else {
    }
    %c0 = arith.constant 0 : index
    %c0_1 = arith.constant 0 : index
    %3 = vector.load %arg28[%c0, %c0_1] : memref<16x64xf32, #tpu.memory_space<vmem>>, vector<16x64xf32>
    %c0_2 = arith.constant 0 : index
    %c0_3 = arith.constant 0 : index
    %c0_4 = arith.constant 0 : index
    %4 = vector.load %arg5[%c0_2, %c0_3, %c0_4] : memref<1x1x64xf32, #tpu.memory_space<vmem>>, vector<1x1x64xf32>
    %5 = vector.shape_cast %4 : vector<1x1x64xf32> to vector<1x64xf32>
    %c0_5 = arith.constant 0 : index
    %c0_6 = arith.constant 0 : index
    %c0_7 = arith.constant 0 : index
    %6 = vector.load %arg6[%c0_5, %c0_6, %c0_7] : memref<1x1x64xf32, #tpu.memory_space<vmem>>, vector<1x1x64xf32>
    %7 = vector.shape_cast %6 : vector<1x1x64xf32> to vector<1x64xf32>
    %cst = arith.constant dense<0.000000e+00> : vector<16xf32>
    %8 = vector.multi_reduction <add>, %3, %cst [1] : vector<16x64xf32> to vector<16xf32>
    %9 = vector.shape_cast %8 : vector<16xf32> to vector<16x1xf32>
    %cst_8 = arith.constant 6.400000e+01 : f32
    %10 = vector.broadcast %cst_8 : f32 to vector<16x1xf32>
    %11 = arith.divf %9, %10 : vector<16x1xf32>
    %12 = vector.broadcast %11 : vector<16x1xf32> to vector<16x64xf32>
    %13 = arith.subf %3, %12 : vector<16x64xf32>
    %14 = arith.mulf %13, %13 : vector<16x64xf32>
    %cst_9 = arith.constant dense<0.000000e+00> : vector<16xf32>
    %15 = vector.multi_reduction <add>, %14, %cst_9 [1] : vector<16x64xf32> to vector<16xf32>
    %16 = vector.shape_cast %15 : vector<16xf32> to vector<16x1xf32>
    %cst_10 = arith.constant 6.400000e+01 : f32
    %17 = vector.broadcast %cst_10 : f32 to vector<16x1xf32>
    %18 = arith.divf %16, %17 : vector<16x1xf32>
    %19 = vector.broadcast %11 : vector<16x1xf32> to vector<16x64xf32>
    %20 = arith.subf %3, %19 : vector<16x64xf32>
    %cst_11 = arith.constant 9.99999996E-13 : f32
    %21 = vector.broadcast %cst_11 : f32 to vector<16x1xf32>
    %22 = arith.addf %18, %21 : vector<16x1xf32>
    %23 = math.rsqrt %22 : vector<16x1xf32>
    %24 = vector.broadcast %23 : vector<16x1xf32> to vector<16x64xf32>
    %25 = arith.mulf %20, %24 : vector<16x64xf32>
    %26 = vector.broadcast %5 : vector<1x64xf32> to vector<16x64xf32>
    %27 = arith.mulf %25, %26 : vector<16x64xf32>
    %28 = vector.broadcast %7 : vector<1x64xf32> to vector<16x64xf32>
    %29 = arith.addf %27, %28 : vector<16x64xf32>
    %30 = arith.truncf %29 : vector<16x64xf32> to vector<16x64xbf16>
    %c0_12 = arith.constant 0 : index
    %c0_13 = arith.constant 0 : index
    %c0_14 = arith.constant 0 : index
    %31 = vector.load %arg7[%c0_12, %c0_13, %c0_14] : memref<1x64x192xbf16, #tpu.memory_space<vmem>>, vector<1x64x192xbf16>
    %32 = vector.shape_cast %31 : vector<1x64x192xbf16> to vector<64x192xbf16>
    %cst_15 = arith.constant dense<0.000000e+00> : vector<16x192xf32>
    %33 = tpu.matmul %30, %32, %cst_15 {dimension_numbers = #tpu.dot_dimension_numbers<[1], [0], [0], [1], [0, 0, 1, 1], [], []>} : vector<16x64xbf16>, vector<64x192xbf16>, vector<16x192xf32> -> vector<16x192xf32>
    %c0_16 = arith.constant 0 : index
    %c0_17 = arith.constant 0 : index
    %c0_18 = arith.constant 0 : index
    %34 = vector.load %arg8[%c0_16, %c0_17, %c0_18] : memref<1x1x192xf32, #tpu.memory_space<vmem>>, vector<1x1x192xf32>
    %35 = vector.shape_cast %34 : vector<1x1x192xf32> to vector<1x192xf32>
    %36 = vector.broadcast %35 : vector<1x192xf32> to vector<16x192xf32>
    %37 = arith.addf %33, %36 : vector<16x192xf32>
    %38 = arith.truncf %37 : vector<16x192xf32> to vector<16x192xbf16>
    %cst_19 = arith.constant 0.000000e+00 : f32
    %39 = vector.broadcast %cst_19 : f32 to vector<16x64xf32>
    %40 = vector.extract_strided_slice %38 {offsets = [0, 0], sizes = [16, 16], strides = [1, 1]} : vector<16x192xbf16> to vector<16x16xbf16>
    %41 = vector.extract_strided_slice %38 {offsets = [0, 64], sizes = [16, 16], strides = [1, 1]} : vector<16x192xbf16> to vector<16x16xbf16>
    %42 = vector.extract_strided_slice %38 {offsets = [0, 128], sizes = [16, 16], strides = [1, 1]} : vector<16x192xbf16> to vector<16x16xbf16>
    %cst_20 = arith.constant dense<0.000000e+00> : vector<16x16xf32>
    %43 = tpu.matmul %40, %41, %cst_20 {dimension_numbers = #tpu.dot_dimension_numbers<[1], [1], [0], [0], [0, 0, 1, 0], [], []>} : vector<16x16xbf16>, vector<16x16xbf16>, vector<16x16xf32> -> vector<16x16xf32>
    %cst_21 = arith.constant 2.500000e-01 : f32
    %44 = vector.broadcast %cst_21 : f32 to vector<16x16xf32>
    %45 = arith.mulf %43, %44 : vector<16x16xf32>
    %c0_22 = arith.constant 0 : index
    %c0_23 = arith.constant 0 : index
    %46 = vector.load %arg4[%c0_22, %c0_23] : memref<16x16xf32, #tpu.memory_space<vmem>>, vector<16x16xf32>
    %47 = arith.addf %45, %46 : vector<16x16xf32>
    %cst_24 = arith.constant dense<0xFF800000> : vector<16xf32>
    %48 = vector.multi_reduction <maximumf>, %47, %cst_24 [1] : vector<16x16xf32> to vector<16xf32>
    %49 = vector.shape_cast %48 : vector<16xf32> to vector<16x1xf32>
    %50 = vector.broadcast %49 : vector<16x1xf32> to vector<16x16xf32>
    %51 = arith.subf %47, %50 : vector<16x16xf32>
    %52 = math.exp %51 : vector<16x16xf32>
    %cst_25 = arith.constant dense<0.000000e+00> : vector<16xf32>
    %53 = vector.multi_reduction <add>, %52, %cst_25 [1] : vector<16x16xf32> to vector<16xf32>
    %54 = vector.shape_cast %53 : vector<16xf32> to vector<16x1xf32>
    %55 = tpu.reciprocal %54 {approx = true} : vector<16x1xf32> -> vector<16x1xf32>
    %56 = vector.broadcast %55 : vector<16x1xf32> to vector<16x16xf32>
    %57 = arith.mulf %52, %56 : vector<16x16xf32>
    %58 = arith.truncf %57 : vector<16x16xf32> to vector<16x16xbf16>
    %cst_26 = arith.constant dense<0.000000e+00> : vector<16x16xf32>
    %59 = tpu.matmul %58, %42, %cst_26 {dimension_numbers = #tpu.dot_dimension_numbers<[1], [0], [0], [1], [0, 0, 1, 1], [], []>} : vector<16x16xbf16>, vector<16x16xbf16>, vector<16x16xf32> -> vector<16x16xf32>
    %60 = arith.truncf %59 : vector<16x16xf32> to vector<16x16xbf16>
    %c0_27 = arith.constant 0 : index
    %c0_28 = arith.constant 0 : index
    %c0_29 = arith.constant 0 : index
    %61 = vector.load %arg9[%c0_27, %c0_28, %c0_29] : memref<1x64x64xbf16, #tpu.memory_space<vmem>>, vector<1x16x64xbf16>
    %62 = vector.shape_cast %61 : vector<1x16x64xbf16> to vector<16x64xbf16>
    %cst_30 = arith.constant dense<0.000000e+00> : vector<16x64xf32>
    %63 = tpu.matmul %60, %62, %cst_30 {dimension_numbers = #tpu.dot_dimension_numbers<[1], [0], [0], [1], [0, 0, 1, 1], [], []>} : vector<16x16xbf16>, vector<16x64xbf16>, vector<16x64xf32> -> vector<16x64xf32>
    %64 = arith.addf %39, %63 : vector<16x64xf32>
    %65 = vector.extract_strided_slice %38 {offsets = [0, 16], sizes = [16, 16], strides = [1, 1]} : vector<16x192xbf16> to vector<16x16xbf16>
    %66 = vector.extract_strided_slice %38 {offsets = [0, 80], sizes = [16, 16], strides = [1, 1]} : vector<16x192xbf16> to vector<16x16xbf16>
    %67 = vector.extract_strided_slice %38 {offsets = [0, 144], sizes = [16, 16], strides = [1, 1]} : vector<16x192xbf16> to vector<16x16xbf16>
    %cst_31 = arith.constant dense<0.000000e+00> : vector<16x16xf32>
    %68 = tpu.matmul %65, %66, %cst_31 {dimension_numbers = #tpu.dot_dimension_numbers<[1], [1], [0], [0], [0, 0, 1, 0], [], []>} : vector<16x16xbf16>, vector<16x16xbf16>, vector<16x16xf32> -> vector<16x16xf32>
    %cst_32 = arith.constant 2.500000e-01 : f32
    %69 = vector.broadcast %cst_32 : f32 to vector<16x16xf32>
    %70 = arith.mulf %68, %69 : vector<16x16xf32>
    %c0_33 = arith.constant 0 : index
    %c0_34 = arith.constant 0 : index
    %71 = vector.load %arg4[%c0_33, %c0_34] : memref<16x16xf32, #tpu.memory_space<vmem>>, vector<16x16xf32>
    %72 = arith.addf %70, %71 : vector<16x16xf32>
    %cst_35 = arith.constant dense<0xFF800000> : vector<16xf32>
    %73 = vector.multi_reduction <maximumf>, %72, %cst_35 [1] : vector<16x16xf32> to vector<16xf32>
    %74 = vector.shape_cast %73 : vector<16xf32> to vector<16x1xf32>
    %75 = vector.broadcast %74 : vector<16x1xf32> to vector<16x16xf32>
    %76 = arith.subf %72, %75 : vector<16x16xf32>
    %77 = math.exp %76 : vector<16x16xf32>
    %cst_36 = arith.constant dense<0.000000e+00> : vector<16xf32>
    %78 = vector.multi_reduction <add>, %77, %cst_36 [1] : vector<16x16xf32> to vector<16xf32>
    %79 = vector.shape_cast %78 : vector<16xf32> to vector<16x1xf32>
    %80 = tpu.reciprocal %79 {approx = true} : vector<16x1xf32> -> vector<16x1xf32>
    %81 = vector.broadcast %80 : vector<16x1xf32> to vector<16x16xf32>
    %82 = arith.mulf %77, %81 : vector<16x16xf32>
    %83 = arith.truncf %82 : vector<16x16xf32> to vector<16x16xbf16>
    %cst_37 = arith.constant dense<0.000000e+00> : vector<16x16xf32>
    %84 = tpu.matmul %83, %67, %cst_37 {dimension_numbers = #tpu.dot_dimension_numbers<[1], [0], [0], [1], [0, 0, 1, 1], [], []>} : vector<16x16xbf16>, vector<16x16xbf16>, vector<16x16xf32> -> vector<16x16xf32>
    %85 = arith.truncf %84 : vector<16x16xf32> to vector<16x16xbf16>
    %c0_38 = arith.constant 0 : index
    %c16 = arith.constant 16 : index
    %c0_39 = arith.constant 0 : index
    %86 = vector.load %arg9[%c0_38, %c16, %c0_39] : memref<1x64x64xbf16, #tpu.memory_space<vmem>>, vector<1x16x64xbf16>
    %87 = vector.shape_cast %86 : vector<1x16x64xbf16> to vector<16x64xbf16>
    %cst_40 = arith.constant dense<0.000000e+00> : vector<16x64xf32>
    %88 = tpu.matmul %85, %87, %cst_40 {dimension_numbers = #tpu.dot_dimension_numbers<[1], [0], [0], [1], [0, 0, 1, 1], [], []>} : vector<16x16xbf16>, vector<16x64xbf16>, vector<16x64xf32> -> vector<16x64xf32>
    %89 = arith.addf %64, %88 : vector<16x64xf32>
    %90 = vector.extract_strided_slice %38 {offsets = [0, 32], sizes = [16, 16], strides = [1, 1]} : vector<16x192xbf16> to vector<16x16xbf16>
    %91 = vector.extract_strided_slice %38 {offsets = [0, 96], sizes = [16, 16], strides = [1, 1]} : vector<16x192xbf16> to vector<16x16xbf16>
    %92 = vector.extract_strided_slice %38 {offsets = [0, 160], sizes = [16, 16], strides = [1, 1]} : vector<16x192xbf16> to vector<16x16xbf16>
    %cst_41 = arith.constant dense<0.000000e+00> : vector<16x16xf32>
    %93 = tpu.matmul %90, %91, %cst_41 {dimension_numbers = #tpu.dot_dimension_numbers<[1], [1], [0], [0], [0, 0, 1, 0], [], []>} : vector<16x16xbf16>, vector<16x16xbf16>, vector<16x16xf32> -> vector<16x16xf32>
    %cst_42 = arith.constant 2.500000e-01 : f32
    %94 = vector.broadcast %cst_42 : f32 to vector<16x16xf32>
    %95 = arith.mulf %93, %94 : vector<16x16xf32>
    %c0_43 = arith.constant 0 : index
    %c0_44 = arith.constant 0 : index
    %96 = vector.load %arg4[%c0_43, %c0_44] : memref<16x16xf32, #tpu.memory_space<vmem>>, vector<16x16xf32>
    %97 = arith.addf %95, %96 : vector<16x16xf32>
    %cst_45 = arith.constant dense<0xFF800000> : vector<16xf32>
    %98 = vector.multi_reduction <maximumf>, %97, %cst_45 [1] : vector<16x16xf32> to vector<16xf32>
    %99 = vector.shape_cast %98 : vector<16xf32> to vector<16x1xf32>
    %100 = vector.broadcast %99 : vector<16x1xf32> to vector<16x16xf32>
    %101 = arith.subf %97, %100 : vector<16x16xf32>
    %102 = math.exp %101 : vector<16x16xf32>
    %cst_46 = arith.constant dense<0.000000e+00> : vector<16xf32>
    %103 = vector.multi_reduction <add>, %102, %cst_46 [1] : vector<16x16xf32> to vector<16xf32>
    %104 = vector.shape_cast %103 : vector<16xf32> to vector<16x1xf32>
    %105 = tpu.reciprocal %104 {approx = true} : vector<16x1xf32> -> vector<16x1xf32>
    %106 = vector.broadcast %105 : vector<16x1xf32> to vector<16x16xf32>
    %107 = arith.mulf %102, %106 : vector<16x16xf32>
    %108 = arith.truncf %107 : vector<16x16xf32> to vector<16x16xbf16>
    %cst_47 = arith.constant dense<0.000000e+00> : vector<16x16xf32>
    %109 = tpu.matmul %108, %92, %cst_47 {dimension_numbers = #tpu.dot_dimension_numbers<[1], [0], [0], [1], [0, 0, 1, 1], [], []>} : vector<16x16xbf16>, vector<16x16xbf16>, vector<16x16xf32> -> vector<16x16xf32>
    %110 = arith.truncf %109 : vector<16x16xf32> to vector<16x16xbf16>
    %c0_48 = arith.constant 0 : index
    %c32 = arith.constant 32 : index
    %c0_49 = arith.constant 0 : index
    %111 = vector.load %arg9[%c0_48, %c32, %c0_49] : memref<1x64x64xbf16, #tpu.memory_space<vmem>>, vector<1x16x64xbf16>
    %112 = vector.shape_cast %111 : vector<1x16x64xbf16> to vector<16x64xbf16>
    %cst_50 = arith.constant dense<0.000000e+00> : vector<16x64xf32>
    %113 = tpu.matmul %110, %112, %cst_50 {dimension_numbers = #tpu.dot_dimension_numbers<[1], [0], [0], [1], [0, 0, 1, 1], [], []>} : vector<16x16xbf16>, vector<16x64xbf16>, vector<16x64xf32> -> vector<16x64xf32>
    %114 = arith.addf %89, %113 : vector<16x64xf32>
    %115 = vector.extract_strided_slice %38 {offsets = [0, 48], sizes = [16, 16], strides = [1, 1]} : vector<16x192xbf16> to vector<16x16xbf16>
    %116 = vector.extract_strided_slice %38 {offsets = [0, 112], sizes = [16, 16], strides = [1, 1]} : vector<16x192xbf16> to vector<16x16xbf16>
    %117 = vector.extract_strided_slice %38 {offsets = [0, 176], sizes = [16, 16], strides = [1, 1]} : vector<16x192xbf16> to vector<16x16xbf16>
    %cst_51 = arith.constant dense<0.000000e+00> : vector<16x16xf32>
    %118 = tpu.matmul %115, %116, %cst_51 {dimension_numbers = #tpu.dot_dimension_numbers<[1], [1], [0], [0], [0, 0, 1, 0], [], []>} : vector<16x16xbf16>, vector<16x16xbf16>, vector<16x16xf32> -> vector<16x16xf32>
    %cst_52 = arith.constant 2.500000e-01 : f32
    %119 = vector.broadcast %cst_52 : f32 to vector<16x16xf32>
    %120 = arith.mulf %118, %119 : vector<16x16xf32>
    %c0_53 = arith.constant 0 : index
    %c0_54 = arith.constant 0 : index
    %121 = vector.load %arg4[%c0_53, %c0_54] : memref<16x16xf32, #tpu.memory_space<vmem>>, vector<16x16xf32>
    %122 = arith.addf %120, %121 : vector<16x16xf32>
    %cst_55 = arith.constant dense<0xFF800000> : vector<16xf32>
    %123 = vector.multi_reduction <maximumf>, %122, %cst_55 [1] : vector<16x16xf32> to vector<16xf32>
    %124 = vector.shape_cast %123 : vector<16xf32> to vector<16x1xf32>
    %125 = vector.broadcast %124 : vector<16x1xf32> to vector<16x16xf32>
    %126 = arith.subf %122, %125 : vector<16x16xf32>
    %127 = math.exp %126 : vector<16x16xf32>
    %cst_56 = arith.constant dense<0.000000e+00> : vector<16xf32>
    %128 = vector.multi_reduction <add>, %127, %cst_56 [1] : vector<16x16xf32> to vector<16xf32>
    %129 = vector.shape_cast %128 : vector<16xf32> to vector<16x1xf32>
    %130 = tpu.reciprocal %129 {approx = true} : vector<16x1xf32> -> vector<16x1xf32>
    %131 = vector.broadcast %130 : vector<16x1xf32> to vector<16x16xf32>
    %132 = arith.mulf %127, %131 : vector<16x16xf32>
    %133 = arith.truncf %132 : vector<16x16xf32> to vector<16x16xbf16>
    %cst_57 = arith.constant dense<0.000000e+00> : vector<16x16xf32>
    %134 = tpu.matmul %133, %117, %cst_57 {dimension_numbers = #tpu.dot_dimension_numbers<[1], [0], [0], [1], [0, 0, 1, 1], [], []>} : vector<16x16xbf16>, vector<16x16xbf16>, vector<16x16xf32> -> vector<16x16xf32>
    %135 = arith.truncf %134 : vector<16x16xf32> to vector<16x16xbf16>
    %c0_58 = arith.constant 0 : index
    %c48 = arith.constant 48 : index
    %c0_59 = arith.constant 0 : index
    %136 = vector.load %arg9[%c0_58, %c48, %c0_59] : memref<1x64x64xbf16, #tpu.memory_space<vmem>>, vector<1x16x64xbf16>
    %137 = vector.shape_cast %136 : vector<1x16x64xbf16> to vector<16x64xbf16>
    %cst_60 = arith.constant dense<0.000000e+00> : vector<16x64xf32>
    %138 = tpu.matmul %135, %137, %cst_60 {dimension_numbers = #tpu.dot_dimension_numbers<[1], [0], [0], [1], [0, 0, 1, 1], [], []>} : vector<16x16xbf16>, vector<16x64xbf16>, vector<16x64xf32> -> vector<16x64xf32>
    %139 = arith.addf %114, %138 : vector<16x64xf32>
    %140 = arith.addf %3, %139 : vector<16x64xf32>
    %c0_61 = arith.constant 0 : index
    %c0_62 = arith.constant 0 : index
    %c0_63 = arith.constant 0 : index
    %141 = vector.load %arg10[%c0_61, %c0_62, %c0_63] : memref<1x1x64xf32, #tpu.memory_space<vmem>>, vector<1x1x64xf32>
    %142 = vector.shape_cast %141 : vector<1x1x64xf32> to vector<1x64xf32>
    %143 = vector.broadcast %142 : vector<1x64xf32> to vector<16x64xf32>
    %144 = arith.addf %140, %143 : vector<16x64xf32>
    %c0_64 = arith.constant 0 : index
    %c0_65 = arith.constant 0 : index
    %c0_66 = arith.constant 0 : index
    %145 = vector.load %arg11[%c0_64, %c0_65, %c0_66] : memref<1x1x64xf32, #tpu.memory_space<vmem>>, vector<1x1x64xf32>
    %146 = vector.shape_cast %145 : vector<1x1x64xf32> to vector<1x64xf32>
    %c0_67 = arith.constant 0 : index
    %c0_68 = arith.constant 0 : index
    %c0_69 = arith.constant 0 : index
    %147 = vector.load %arg12[%c0_67, %c0_68, %c0_69] : memref<1x1x64xf32, #tpu.memory_space<vmem>>, vector<1x1x64xf32>
    %148 = vector.shape_cast %147 : vector<1x1x64xf32> to vector<1x64xf32>
    %cst_70 = arith.constant dense<0.000000e+00> : vector<16xf32>
    %149 = vector.multi_reduction <add>, %144, %cst_70 [1] : vector<16x64xf32> to vector<16xf32>
    %150 = vector.shape_cast %149 : vector<16xf32> to vector<16x1xf32>
    %cst_71 = arith.constant 6.400000e+01 : f32
    %151 = vector.broadcast %cst_71 : f32 to vector<16x1xf32>
    %152 = arith.divf %150, %151 : vector<16x1xf32>
    %153 = vector.broadcast %152 : vector<16x1xf32> to vector<16x64xf32>
    %154 = arith.subf %144, %153 : vector<16x64xf32>
    %155 = arith.mulf %154, %154 : vector<16x64xf32>
    %cst_72 = arith.constant dense<0.000000e+00> : vector<16xf32>
    %156 = vector.multi_reduction <add>, %155, %cst_72 [1] : vector<16x64xf32> to vector<16xf32>
    %157 = vector.shape_cast %156 : vector<16xf32> to vector<16x1xf32>
    %cst_73 = arith.constant 6.400000e+01 : f32
    %158 = vector.broadcast %cst_73 : f32 to vector<16x1xf32>
    %159 = arith.divf %157, %158 : vector<16x1xf32>
    %160 = vector.broadcast %152 : vector<16x1xf32> to vector<16x64xf32>
    %161 = arith.subf %144, %160 : vector<16x64xf32>
    %cst_74 = arith.constant 9.99999996E-13 : f32
    %162 = vector.broadcast %cst_74 : f32 to vector<16x1xf32>
    %163 = arith.addf %159, %162 : vector<16x1xf32>
    %164 = math.rsqrt %163 : vector<16x1xf32>
    %165 = vector.broadcast %164 : vector<16x1xf32> to vector<16x64xf32>
    %166 = arith.mulf %161, %165 : vector<16x64xf32>
    %167 = vector.broadcast %146 : vector<1x64xf32> to vector<16x64xf32>
    %168 = arith.mulf %166, %167 : vector<16x64xf32>
    %169 = vector.broadcast %148 : vector<1x64xf32> to vector<16x64xf32>
    %170 = arith.addf %168, %169 : vector<16x64xf32>
    %171 = arith.truncf %170 : vector<16x64xf32> to vector<16x64xbf16>
    %c0_75 = arith.constant 0 : index
    %c0_76 = arith.constant 0 : index
    %c0_77 = arith.constant 0 : index
    %172 = vector.load %arg13[%c0_75, %c0_76, %c0_77] : memref<1x64x256xbf16, #tpu.memory_space<vmem>>, vector<1x64x256xbf16>
    %173 = vector.shape_cast %172 : vector<1x64x256xbf16> to vector<64x256xbf16>
    %cst_78 = arith.constant dense<0.000000e+00> : vector<16x256xf32>
    %174 = tpu.matmul %171, %173, %cst_78 {dimension_numbers = #tpu.dot_dimension_numbers<[1], [0], [0], [1], [0, 0, 1, 1], [], []>} : vector<16x64xbf16>, vector<64x256xbf16>, vector<16x256xf32> -> vector<16x256xf32>
    %c0_79 = arith.constant 0 : index
    %c0_80 = arith.constant 0 : index
    %c0_81 = arith.constant 0 : index
    %175 = vector.load %arg14[%c0_79, %c0_80, %c0_81] : memref<1x1x256xf32, #tpu.memory_space<vmem>>, vector<1x1x256xf32>
    %176 = vector.shape_cast %175 : vector<1x1x256xf32> to vector<1x256xf32>
    %177 = vector.broadcast %176 : vector<1x256xf32> to vector<16x256xf32>
    %178 = arith.addf %174, %177 : vector<16x256xf32>
    %cst_82 = arith.constant 5.000000e-01 : f32
    %179 = vector.broadcast %cst_82 : f32 to vector<16x256xf32>
    %180 = arith.mulf %179, %178 : vector<16x256xf32>
    %cst_83 = arith.constant 0.707106769 : f32
    %181 = vector.broadcast %cst_83 : f32 to vector<16x256xf32>
    %182 = arith.mulf %178, %181 : vector<16x256xf32>
    %183 = math.absf %182 : vector<16x256xf32>
    %cst_84 = arith.constant 0.327591091 : f32
    %184 = vector.broadcast %cst_84 : f32 to vector<16x256xf32>
    %185 = arith.mulf %184, %183 : vector<16x256xf32>
    %cst_85 = arith.constant 1.000000e+00 : f32
    %186 = vector.broadcast %cst_85 : f32 to vector<16x256xf32>
    %187 = arith.addf %186, %185 : vector<16x256xf32>
    %cst_86 = arith.constant 1.000000e+00 : f32
    %188 = vector.broadcast %cst_86 : f32 to vector<16x256xf32>
    %189 = arith.divf %188, %187 : vector<16x256xf32>
    %cst_87 = arith.constant 1.06140542 : f32
    %190 = vector.broadcast %cst_87 : f32 to vector<16x256xf32>
    %191 = arith.mulf %190, %189 : vector<16x256xf32>
    %cst_88 = arith.constant -1.45315206 : f32
    %192 = vector.broadcast %cst_88 : f32 to vector<16x256xf32>
    %193 = arith.addf %191, %192 : vector<16x256xf32>
    %194 = arith.mulf %193, %189 : vector<16x256xf32>
    %cst_89 = arith.constant 1.42141378 : f32
    %195 = vector.broadcast %cst_89 : f32 to vector<16x256xf32>
    %196 = arith.addf %194, %195 : vector<16x256xf32>
    %197 = arith.mulf %196, %189 : vector<16x256xf32>
    %cst_90 = arith.constant -0.284496725 : f32
    %198 = vector.broadcast %cst_90 : f32 to vector<16x256xf32>
    %199 = arith.addf %197, %198 : vector<16x256xf32>
    %200 = arith.mulf %199, %189 : vector<16x256xf32>
    %cst_91 = arith.constant 0.254829586 : f32
    %201 = vector.broadcast %cst_91 : f32 to vector<16x256xf32>
    %202 = arith.addf %200, %201 : vector<16x256xf32>
    %203 = arith.mulf %202, %189 : vector<16x256xf32>
    %cst_92 = arith.constant 0.000000e+00 : f32
    %204 = vector.broadcast %cst_92 : f32 to vector<16x256xf32>
    %205 = arith.subf %204, %183 : vector<16x256xf32>
    %206 = arith.mulf %205, %183 : vector<16x256xf32>
    %207 = math.exp %206 : vector<16x256xf32>
    %208 = arith.mulf %203, %207 : vector<16x256xf32>
    %cst_93 = arith.constant 1.000000e+00 : f32
    %209 = vector.broadcast %cst_93 : f32 to vector<16x256xf32>
    %210 = arith.subf %209, %208 : vector<16x256xf32>
    %cst_94 = arith.constant 0.000000e+00 : f32
    %211 = vector.broadcast %cst_94 : f32 to vector<16x256xf32>
    %212 = arith.cmpf oge, %182, %211 : vector<16x256xf32>
    %cst_95 = arith.constant 0.000000e+00 : f32
    %213 = vector.broadcast %cst_95 : f32 to vector<16x256xf32>
    %214 = arith.subf %213, %210 : vector<16x256xf32>
    %215 = arith.select %212, %210, %214 : vector<16x256xi1>, vector<16x256xf32>
    %cst_96 = arith.constant 1.000000e+00 : f32
    %216 = vector.broadcast %cst_96 : f32 to vector<16x256xf32>
    %217 = arith.addf %216, %215 : vector<16x256xf32>
    %218 = arith.mulf %180, %217 : vector<16x256xf32>
    %219 = arith.truncf %218 : vector<16x256xf32> to vector<16x256xbf16>
    %c0_97 = arith.constant 0 : index
    %c0_98 = arith.constant 0 : index
    %c0_99 = arith.constant 0 : index
    %220 = vector.load %arg15[%c0_97, %c0_98, %c0_99] : memref<1x256x64xbf16, #tpu.memory_space<vmem>>, vector<1x256x64xbf16>
    %221 = vector.shape_cast %220 : vector<1x256x64xbf16> to vector<256x64xbf16>
    %cst_100 = arith.constant dense<0.000000e+00> : vector<16x64xf32>
    %222 = tpu.matmul %219, %221, %cst_100 {dimension_numbers = #tpu.dot_dimension_numbers<[1], [0], [0], [1], [0, 0, 1, 1], [], []>} : vector<16x256xbf16>, vector<256x64xbf16>, vector<16x64xf32> -> vector<16x64xf32>
    %c0_101 = arith.constant 0 : index
    %c0_102 = arith.constant 0 : index
    %c0_103 = arith.constant 0 : index
    %223 = vector.load %arg16[%c0_101, %c0_102, %c0_103] : memref<1x1x64xf32, #tpu.memory_space<vmem>>, vector<1x1x64xf32>
    %224 = vector.shape_cast %223 : vector<1x1x64xf32> to vector<1x64xf32>
    %225 = vector.broadcast %224 : vector<1x64xf32> to vector<16x64xf32>
    %226 = arith.addf %222, %225 : vector<16x64xf32>
    %227 = arith.addf %144, %226 : vector<16x64xf32>
    %c0_104 = arith.constant 0 : index
    %c0_105 = arith.constant 0 : index
    %228 = vector.load %arg28[%c0_104, %c0_105] : memref<16x64xf32, #tpu.memory_space<vmem>>, vector<16x64xf32>
    tpu.vector_store %arg28[%c0_104, %c0_105], %227 {strides = array<i32>} : memref<16x64xf32, #tpu.memory_space<vmem>>, vector<16x64xf32>,
    %c1_i32 = arith.constant 1 : i32
    %229 = arith.cmpi eq, %arg0, %c1_i32 : i32
    %230 = arith.extui %229 : i1 to i32
    %c0_i32_106 = arith.constant 0 : i32
    %231 = arith.cmpi ne, %230, %c0_i32_106 : i32
    scf.if %231 {
      %232 = vector.extract_strided_slice %227 {offsets = [0, 0], sizes = [1, 64], strides = [1, 1]} : vector<16x64xf32> to vector<1x64xf32>
      %233 = vector.extract_strided_slice %227 {offsets = [8, 0], sizes = [1, 64], strides = [1, 1]} : vector<16x64xf32> to vector<1x64xf32>
      %234 = tpu.concatenate %232, %233 in 0 : vector<1x64xf32>, vector<1x64xf32> -> vector<2x64xf32>
      %c0_107 = arith.constant 0 : index
      %c0_108 = arith.constant 0 : index
      %235 = vector.load %arg17[%c0_107, %c0_108] : memref<1x64xf32, #tpu.memory_space<vmem>>, vector<1x64xf32>
      %c0_109 = arith.constant 0 : index
      %c0_110 = arith.constant 0 : index
      %236 = vector.load %arg18[%c0_109, %c0_110] : memref<1x64xf32, #tpu.memory_space<vmem>>, vector<1x64xf32>
      %cst_111 = arith.constant dense<0.000000e+00> : vector<2xf32>
      %237 = vector.multi_reduction <add>, %234, %cst_111 [1] : vector<2x64xf32> to vector<2xf32>
      %238 = vector.shape_cast %237 : vector<2xf32> to vector<2x1xf32>
      %cst_112 = arith.constant 6.400000e+01 : f32
      %239 = vector.broadcast %cst_112 : f32 to vector<2x1xf32>
      %240 = arith.divf %238, %239 : vector<2x1xf32>
      %241 = vector.broadcast %240 : vector<2x1xf32> to vector<2x64xf32>
      %242 = arith.subf %234, %241 : vector<2x64xf32>
      %243 = arith.mulf %242, %242 : vector<2x64xf32>
      %cst_113 = arith.constant dense<0.000000e+00> : vector<2xf32>
      %244 = vector.multi_reduction <add>, %243, %cst_113 [1] : vector<2x64xf32> to vector<2xf32>
      %245 = vector.shape_cast %244 : vector<2xf32> to vector<2x1xf32>
      %cst_114 = arith.constant 6.400000e+01 : f32
      %246 = vector.broadcast %cst_114 : f32 to vector<2x1xf32>
      %247 = arith.divf %245, %246 : vector<2x1xf32>
      %248 = vector.broadcast %240 : vector<2x1xf32> to vector<2x64xf32>
      %249 = arith.subf %234, %248 : vector<2x64xf32>
      %cst_115 = arith.constant 9.99999996E-13 : f32
      %250 = vector.broadcast %cst_115 : f32 to vector<2x1xf32>
      %251 = arith.addf %247, %250 : vector<2x1xf32>
      %252 = math.rsqrt %251 : vector<2x1xf32>
      %253 = vector.broadcast %252 : vector<2x1xf32> to vector<2x64xf32>
      %254 = arith.mulf %249, %253 : vector<2x64xf32>
      %255 = vector.broadcast %235 : vector<1x64xf32> to vector<2x64xf32>
      %256 = arith.mulf %254, %255 : vector<2x64xf32>
      %257 = vector.broadcast %236 : vector<1x64xf32> to vector<2x64xf32>
      %258 = arith.addf %256, %257 : vector<2x64xf32>
      %259 = arith.truncf %258 : vector<2x64xf32> to vector<2x64xbf16>
      %c0_116 = arith.constant 0 : index
      %c0_117 = arith.constant 0 : index
      %260 = vector.load %arg19[%c0_116, %c0_117] : memref<64x64xbf16, #tpu.memory_space<vmem>>, vector<64x64xbf16>
      %cst_118 = arith.constant dense<0.000000e+00> : vector<2x64xf32>
      %261 = tpu.matmul %259, %260, %cst_118 {dimension_numbers = #tpu.dot_dimension_numbers<[1], [0], [0], [1], [0, 0, 1, 1], [], []>} : vector<2x64xbf16>, vector<64x64xbf16>, vector<2x64xf32> -> vector<2x64xf32>
      %c0_119 = arith.constant 0 : index
      %c0_120 = arith.constant 0 : index
      %262 = vector.load %arg20[%c0_119, %c0_120] : memref<1x64xf32, #tpu.memory_space<vmem>>, vector<1x64xf32>
      %263 = vector.broadcast %262 : vector<1x64xf32> to vector<2x64xf32>
      %264 = arith.addf %261, %263 : vector<2x64xf32>
      %cst_121 = arith.constant 0.000000e+00 : f32
      %265 = vector.broadcast %cst_121 : f32 to vector<2x64xf32>
      %266 = arith.cmpf ogt, %264, %265 : vector<2x64xf32>
      %cst_122 = arith.constant 0.00999999977 : f32
      %267 = vector.broadcast %cst_122 : f32 to vector<2x64xf32>
      %268 = arith.mulf %267, %264 : vector<2x64xf32>
      %269 = arith.select %266, %264, %268 : vector<2x64xi1>, vector<2x64xf32>
      %270 = arith.truncf %269 : vector<2x64xf32> to vector<2x64xbf16>
      %c0_123 = arith.constant 0 : index
      %c0_124 = arith.constant 0 : index
      %271 = vector.load %arg21[%c0_123, %c0_124] : memref<64x32xbf16, #tpu.memory_space<vmem>>, vector<64x32xbf16>
      %cst_125 = arith.constant dense<0.000000e+00> : vector<2x32xf32>
      %272 = tpu.matmul %270, %271, %cst_125 {dimension_numbers = #tpu.dot_dimension_numbers<[1], [0], [0], [1], [0, 0, 1, 1], [], []>} : vector<2x64xbf16>, vector<64x32xbf16>, vector<2x32xf32> -> vector<2x32xf32>
      %c0_126 = arith.constant 0 : index
      %c0_127 = arith.constant 0 : index
      %273 = vector.load %arg22[%c0_126, %c0_127] : memref<1x32xf32, #tpu.memory_space<vmem>>, vector<1x32xf32>
      %274 = vector.broadcast %273 : vector<1x32xf32> to vector<2x32xf32>
      %275 = arith.addf %272, %274 : vector<2x32xf32>
      %cst_128 = arith.constant 0.000000e+00 : f32
      %276 = vector.broadcast %cst_128 : f32 to vector<2x32xf32>
      %277 = arith.cmpf ogt, %275, %276 : vector<2x32xf32>
      %cst_129 = arith.constant 0.00999999977 : f32
      %278 = vector.broadcast %cst_129 : f32 to vector<2x32xf32>
      %279 = arith.mulf %278, %275 : vector<2x32xf32>
      %280 = arith.select %277, %275, %279 : vector<2x32xi1>, vector<2x32xf32>
      %281 = arith.truncf %280 : vector<2x32xf32> to vector<2x32xbf16>
      %c0_130 = arith.constant 0 : index
      %c0_131 = arith.constant 0 : index
      %282 = vector.load %arg23[%c0_130, %c0_131] : memref<32x16xbf16, #tpu.memory_space<vmem>>, vector<32x16xbf16>
      %cst_132 = arith.constant dense<0.000000e+00> : vector<2x16xf32>
      %283 = tpu.matmul %281, %282, %cst_132 {dimension_numbers = #tpu.dot_dimension_numbers<[1], [0], [0], [1], [0, 0, 1, 1], [], []>} : vector<2x32xbf16>, vector<32x16xbf16>, vector<2x16xf32> -> vector<2x16xf32>
      %c0_133 = arith.constant 0 : index
      %c0_134 = arith.constant 0 : index
      %284 = vector.load %arg24[%c0_133, %c0_134] : memref<1x16xf32, #tpu.memory_space<vmem>>, vector<1x16xf32>
      %285 = vector.broadcast %284 : vector<1x16xf32> to vector<2x16xf32>
      %286 = arith.addf %283, %285 : vector<2x16xf32>
      %cst_135 = arith.constant 0.000000e+00 : f32
      %287 = vector.broadcast %cst_135 : f32 to vector<2x16xf32>
      %288 = arith.cmpf ogt, %286, %287 : vector<2x16xf32>
      %cst_136 = arith.constant 0.00999999977 : f32
      %289 = vector.broadcast %cst_136 : f32 to vector<2x16xf32>
      %290 = arith.mulf %289, %286 : vector<2x16xf32>
      %291 = arith.select %288, %286, %290 : vector<2x16xi1>, vector<2x16xf32>
      %292 = arith.truncf %291 : vector<2x16xf32> to vector<2x16xbf16>
      %c0_137 = arith.constant 0 : index
      %c0_138 = arith.constant 0 : index
      %293 = vector.load %arg25[%c0_137, %c0_138] : memref<16x128xbf16, #tpu.memory_space<vmem>>, vector<16x128xbf16>
      %cst_139 = arith.constant dense<0.000000e+00> : vector<2x128xf32>
      %294 = tpu.matmul %292, %293, %cst_139 {dimension_numbers = #tpu.dot_dimension_numbers<[1], [0], [0], [1], [0, 0, 1, 1], [], []>} : vector<2x16xbf16>, vector<16x128xbf16>, vector<2x128xf32> -> vector<2x128xf32>
      %c0_140 = arith.constant 0 : index
      %c0_141 = arith.constant 0 : index
      %295 = vector.load %arg26[%c0_140, %c0_141] : memref<1x128xf32, #tpu.memory_space<vmem>>, vector<1x128xf32>
      %296 = vector.broadcast %295 : vector<1x128xf32> to vector<2x128xf32>
      %297 = arith.addf %294, %296 : vector<2x128xf32>
      %298 = tpu.iota {dimensions = array<i32: 1>} : vector<2x128xi32>
      %c8_i32 = arith.constant 8 : i32
      %299 = vector.broadcast %c8_i32 : i32 to vector<2x128xi32>
      %300 = arith.cmpi sge, %298, %299 : vector<2x128xi32>
      %c12_i32 = arith.constant 12 : i32
      %301 = vector.broadcast %c12_i32 : i32 to vector<2x128xi32>
      %302 = arith.cmpi slt, %298, %301 : vector<2x128xi32>
      %303 = arith.andi %300, %302 : vector<2x128xi1>
      %cst_142 = arith.constant 0.000000e+00 : f32
      %304 = vector.broadcast %cst_142 : f32 to vector<2x128xf32>
      %305 = arith.subf %304, %297 : vector<2x128xf32>
      %306 = math.exp %305 : vector<2x128xf32>
      %cst_143 = arith.constant 1.000000e+00 : f32
      %307 = vector.broadcast %cst_143 : f32 to vector<2x128xf32>
      %308 = arith.addf %307, %306 : vector<2x128xf32>
      %cst_144 = arith.constant 1.000000e+00 : f32
      %309 = vector.broadcast %cst_144 : f32 to vector<2x128xf32>
      %310 = arith.divf %309, %308 : vector<2x128xf32>
      %311 = arith.select %303, %310, %297 : vector<2x128xi1>, vector<2x128xf32>
      %c0_145 = arith.constant 0 : index
      %c0_146 = arith.constant 0 : index
      %312 = vector.load %arg27[%c0_145, %c0_146] : memref<2x128xf32, #tpu.memory_space<vmem>>, vector<2x128xf32>
      tpu.vector_store %arg27[%c0_145, %c0_146], %311 {strides = array<i32>} : memref<2x128xf32, #tpu.memory_space<vmem>>, vector<2x128xf32>,
    } else {
    }
    return
  }
  func.func @transform_0(%arg0: i32) -> (i32, i32) {
    %c0_i32 = arith.constant 0 : i32
    %c0_i32_0 = arith.constant 0 : i32
    %c0_i32_1 = arith.constant 0 : i32
    return %c0_i32, %c0_i32_0 : i32, i32
  }
  func.func @transform_1(%arg0: i32) -> (i32, i32) {
    %c0_i32 = arith.constant 0 : i32
    %c0_i32_0 = arith.constant 0 : i32
    %c0_i32_1 = arith.constant 0 : i32
    return %c0_i32, %c0_i32_0 : i32, i32
  }
  func.func @transform_2(%arg0: i32) -> (i32, i32) {
    %c0_i32 = arith.constant 0 : i32
    %c0_i32_0 = arith.constant 0 : i32
    %c0_i32_1 = arith.constant 0 : i32
    return %c0_i32, %c0_i32_0 : i32, i32
  }
  func.func @transform_3(%arg0: i32) -> (i32, i32) {
    %c0_i32 = arith.constant 0 : i32
    %c0_i32_0 = arith.constant 0 : i32
    %c0_i32_1 = arith.constant 0 : i32
    return %c0_i32, %c0_i32_0 : i32, i32
  }
  func.func @transform_4(%arg0: i32) -> (i32, i32, i32) {
    %c0_i32 = arith.constant 0 : i32
    %c0_i32_0 = arith.constant 0 : i32
    %c0_i32_1 = arith.constant 0 : i32
    return %arg0, %c0_i32, %c0_i32_0 : i32, i32, i32
  }
  func.func @transform_5(%arg0: i32) -> (i32, i32, i32) {
    %c0_i32 = arith.constant 0 : i32
    %c0_i32_0 = arith.constant 0 : i32
    %c0_i32_1 = arith.constant 0 : i32
    return %arg0, %c0_i32, %c0_i32_0 : i32, i32, i32
  }
  func.func @transform_6(%arg0: i32) -> (i32, i32, i32) {
    %c0_i32 = arith.constant 0 : i32
    %c0_i32_0 = arith.constant 0 : i32
    %c0_i32_1 = arith.constant 0 : i32
    return %arg0, %c0_i32, %c0_i32_0 : i32, i32, i32
  }
  func.func @transform_7(%arg0: i32) -> (i32, i32, i32) {
    %c0_i32 = arith.constant 0 : i32
    %c0_i32_0 = arith.constant 0 : i32
    %c0_i32_1 = arith.constant 0 : i32
    return %arg0, %c0_i32, %c0_i32_0 : i32, i32, i32
  }
  func.func @transform_8(%arg0: i32) -> (i32, i32, i32) {
    %c0_i32 = arith.constant 0 : i32
    %c0_i32_0 = arith.constant 0 : i32
    %c0_i32_1 = arith.constant 0 : i32
    return %arg0, %c0_i32, %c0_i32_0 : i32, i32, i32
  }
  func.func @transform_9(%arg0: i32) -> (i32, i32, i32) {
    %c0_i32 = arith.constant 0 : i32
    %c0_i32_0 = arith.constant 0 : i32
    %c0_i32_1 = arith.constant 0 : i32
    return %arg0, %c0_i32, %c0_i32_0 : i32, i32, i32
  }
  func.func @transform_10(%arg0: i32) -> (i32, i32, i32) {
    %c0_i32 = arith.constant 0 : i32
    %c0_i32_0 = arith.constant 0 : i32
    %c0_i32_1 = arith.constant 0 : i32
    return %arg0, %c0_i32, %c0_i32_0 : i32, i32, i32
  }
  func.func @transform_11(%arg0: i32) -> (i32, i32, i32) {
    %c0_i32 = arith.constant 0 : i32
    %c0_i32_0 = arith.constant 0 : i32
    %c0_i32_1 = arith.constant 0 : i32
    return %arg0, %c0_i32, %c0_i32_0 : i32, i32, i32
  }
  func.func @transform_12(%arg0: i32) -> (i32, i32, i32) {
    %c0_i32 = arith.constant 0 : i32
    %c0_i32_0 = arith.constant 0 : i32
    %c0_i32_1 = arith.constant 0 : i32
    return %arg0, %c0_i32, %c0_i32_0 : i32, i32, i32
  }
  func.func @transform_13(%arg0: i32) -> (i32, i32, i32) {
    %c0_i32 = arith.constant 0 : i32
    %c0_i32_0 = arith.constant 0 : i32
    %c0_i32_1 = arith.constant 0 : i32
    return %arg0, %c0_i32, %c0_i32_0 : i32, i32, i32
  }
  func.func @transform_14(%arg0: i32) -> (i32, i32, i32) {
    %c0_i32 = arith.constant 0 : i32
    %c0_i32_0 = arith.constant 0 : i32
    %c0_i32_1 = arith.constant 0 : i32
    return %arg0, %c0_i32, %c0_i32_0 : i32, i32, i32
  }
  func.func @transform_15(%arg0: i32) -> (i32, i32, i32) {
    %c0_i32 = arith.constant 0 : i32
    %c0_i32_0 = arith.constant 0 : i32
    %c0_i32_1 = arith.constant 0 : i32
    return %arg0, %c0_i32, %c0_i32_0 : i32, i32, i32
  }
  func.func @transform_16(%arg0: i32) -> (i32, i32) {
    %c0_i32 = arith.constant 0 : i32
    %c0_i32_0 = arith.constant 0 : i32
    %c0_i32_1 = arith.constant 0 : i32
    return %c0_i32, %c0_i32_0 : i32, i32
  }
  func.func @transform_17(%arg0: i32) -> (i32, i32) {
    %c0_i32 = arith.constant 0 : i32
    %c0_i32_0 = arith.constant 0 : i32
    %c0_i32_1 = arith.constant 0 : i32
    return %c0_i32, %c0_i32_0 : i32, i32
  }
  func.func @transform_18(%arg0: i32) -> (i32, i32) {
    %c0_i32 = arith.constant 0 : i32
    %c0_i32_0 = arith.constant 0 : i32
    %c0_i32_1 = arith.constant 0 : i32
    return %c0_i32, %c0_i32_0 : i32, i32
  }
  func.func @transform_19(%arg0: i32) -> (i32, i32) {
    %c0_i32 = arith.constant 0 : i32
    %c0_i32_0 = arith.constant 0 : i32
    %c0_i32_1 = arith.constant 0 : i32
    return %c0_i32, %c0_i32_0 : i32, i32
  }
  func.func @transform_20(%arg0: i32) -> (i32, i32) {
    %c0_i32 = arith.constant 0 : i32
    %c0_i32_0 = arith.constant 0 : i32
    %c0_i32_1 = arith.constant 0 : i32
    return %c0_i32, %c0_i32_0 : i32, i32
  }
  func.func @transform_21(%arg0: i32) -> (i32, i32) {
    %c0_i32 = arith.constant 0 : i32
    %c0_i32_0 = arith.constant 0 : i32
    %c0_i32_1 = arith.constant 0 : i32
    return %c0_i32, %c0_i32_0 : i32, i32
  }
  func.func @transform_22(%arg0: i32) -> (i32, i32) {
    %c0_i32 = arith.constant 0 : i32
    %c0_i32_0 = arith.constant 0 : i32
    %c0_i32_1 = arith.constant 0 : i32
    return %c0_i32, %c0_i32_0 : i32, i32
  }
  func.func @transform_23(%arg0: i32) -> (i32, i32) {
    %c0_i32 = arith.constant 0 : i32
    %c0_i32_0 = arith.constant 0 : i32
    %c0_i32_1 = arith.constant 0 : i32
    return %c0_i32, %c0_i32_0 : i32, i32
  }
  func.func @transform_24(%arg0: i32) -> (i32, i32) {
    %c0_i32 = arith.constant 0 : i32
    %c0_i32_0 = arith.constant 0 : i32
    %c0_i32_1 = arith.constant 0 : i32
    return %c0_i32, %c0_i32_0 : i32, i32
  }
  func.func @transform_25(%arg0: i32) -> (i32, i32) {
    %c0_i32 = arith.constant 0 : i32
    %c0_i32_0 = arith.constant 0 : i32
    %c0_i32_1 = arith.constant 0 : i32
    return %c0_i32, %c0_i32_0 : i32, i32
  }
  func.func @transform_26(%arg0: i32) -> (i32, i32) {
    %c0_i32 = arith.constant 0 : i32
    %c0_i32_0 = arith.constant 0 : i32
    %c0_i32_1 = arith.constant 0 : i32
    return %c0_i32, %c0_i32_0 : i32, i32
  }
}

</mosaic_0001>

<bundles_post_ra>
// kernel: vit_forward.1
= control target key start
LH: loop header
LB: loop body
LE: loop exit
PB: predicated region body
PF: predicated region fallthrough
CT: control target
= control target key end

     0   :  { %s4068_s27 = smov 0   ;;  %s4636_s0 = inlined_call_operand.vmem [shape: bf16[16,768], index: 0, kind: input, shape index: {}]   ;;  %s4637_s1 = inlined_call_operand.vmem [shape: bf16[768,64], index: 1, kind: input, shape index: {}]   ;;  %s4638_s2 = inlined_call_operand.vmem [shape: f32[16,64], index: 2, kind: input, shape index: {}]   ;;  %s4639_s3 = inlined_call_operand.vmem [shape: f32[16,16], index: 3, kind: input, shape index: {}]   ;;  %s4640_s4 = inlined_call_operand.vmem [shape: f32[2,1,64], index: 4, kind: input, shape index: {}]   ;;  %s4641_s5 = inlined_call_operand.vmem [shape: f32[2,1,64], index: 5, kind: input, shape index: {}]   ;;  %s4642_s6 = inlined_call_operand.vmem [shape: bf16[2,64,192], index: 6, kind: input, shape index: {}]   ;;  %s4643_s7 = inlined_call_operand.vmem [shape: f32[2,1,192], index: 7, kind: input, shape index: {}]   ;;  %s4644_s8 = inlined_call_operand.vmem [shape: bf16[2,64,64], index: 8, kind: input, shape index: {}]   ;;  %s4645_s9 = inlined_call_operand.vmem [shape: f32[2,1,64], index: 9, kind: input, shape index: {}]   ;;  %s4646_s10 = inlined_call_operand.vmem [shape: f32[2,1,64], index: 10, kind: input, shape index: {}]   ;;  %s4647_s11 = inlined_call_operand.vmem [shape: f32[2,1,64], index: 11, kind: input, shape index: {}]   ;;  %s4648_s12 = inlined_call_operand.vmem [shape: bf16[2,64,256], index: 12, kind: input, shape index: {}]   ;;  %s4649_s13 = inlined_call_operand.vmem [shape: f32[2,1,256], index: 13, kind: input, shape index: {}]   ;;  %s4650_s14 = inlined_call_operand.vmem [shape: bf16[2,256,64], index: 14, kind: input, shape index: {}]   ;;  %s4651_s15 = inlined_call_operand.vmem [shape: f32[2,1,64], index: 15, kind: input, shape index: {}]   ;;  %s4652_s16 = inlined_call_operand.vmem [shape: f32[1,64], index: 16, kind: input, shape index: {}]   ;;  %s4653_s17 = inlined_call_operand.vmem [shape: f32[1,64], index: 17, kind: input, shape index: {}]   ;;  %s4654_s18 = inlined_call_operand.vmem [shape: bf16[64,64], index: 18, kind: input, shape index: {}]   ;;  %s4655_s19 = inlined_call_operand.vmem [shape: f32[1,64], index: 19, kind: input, shape index: {}]   ;;  %s4656_s20 = inlined_call_operand.vmem [shape: bf16[64,32], index: 20, kind: input, shape index: {}]   ;;  %s4657_s21 = inlined_call_operand.vmem [shape: f32[1,32], index: 21, kind: input, shape index: {}]   ;;  %s4658_s22 = inlined_call_operand.vmem [shape: bf16[32,16], index: 22, kind: input, shape index: {}]   ;;  %s4659_s23 = inlined_call_operand.vmem [shape: f32[1,16], index: 23, kind: input, shape index: {}]   ;;  %s4660_s24 = inlined_call_operand.vmem [shape: bf16[16,128], index: 24, kind: input, shape index: {}]   ;;  %s4661_s25 = inlined_call_operand.vmem [shape: f32[1,128], index: 25, kind: input, shape index: {}]   ;;  %s4662_s26 = inlined_call_operand.vmem [shape: f32[2,128], index: 26, kind: output, shape index: {}]  }
   0x1   :  { %4670 = sst [smem:[#allocation4_spill]] %s4636_s0 }
   0x2   :  { %4671 = sst [smem:[#allocation5_spill]] %s4637_s1 }
   0x3   :  { %4672 = sst [smem:[#allocation6_spill]] %s4638_s2 }
   0x4   :  { %4673 = sst [smem:[#allocation7_spill]] %s4639_s3 }
   0x5   :  { %4674 = sst [smem:[#allocation8_spill]] %s4640_s4 }
   0x6   :  { %4675 = sst [smem:[#allocation9_spill]] %s4641_s5 }
   0x7   :  { %4676 = sst [smem:[#allocation10_spill]] %s4642_s6 }
   0x8   :  { %4677 = sst [smem:[#allocation11_spill]] %s4643_s7 }
   0x9   :  { %4678 = sst [smem:[#allocation12_spill]] %s4644_s8 }
   0xa   :  { %4679 = sst [smem:[#allocation13_spill]] %s4645_s9 }
   0xb   :  { %4680 = sst [smem:[#allocation14_spill]] %s4646_s10 }
   0xc   :  { %4681 = sst [smem:[#allocation15_spill]] %s4652_s16 }
   0xd   :  { %4682 = sst [smem:[#allocation16_spill]] %s4653_s17 }
   0xe   :  { %4683 = sst [smem:[#allocation17_spill]] %s4655_s19 }
   0xf   :  { %4684 = sst [smem:[#allocation18_spill]] %s4656_s20 }
  0x10   :  { %4685 = sst [smem:[#allocation19_spill]] %s4657_s21 }
  0x11   :  { %4686 = sst [smem:[#allocation20_spill]] %s4658_s22 }
  0x12   :  { %4687 = sst [smem:[#allocation21_spill]] %s4659_s23 }
  0x13   :  { %4688 = sst [smem:[#allocation22_spill]] %s4660_s24 }
  0x14   :  { %4689 = sst [smem:[#allocation23_spill]] %s4661_s25 }
  0x15   :  { %4690 = sst [smem:[#allocation24_spill]] %s4662_s26 }
  0x16 LB: > { %4691 = sst [smem:[#allocation3_spill]] %s3919_s27  ;;  %s4074_s3 = sadd.s32 4294967295, %s3919_s27   ;;  %s3919_s27 = sphi %s4068_s27, %s36_s27  }
  0x17   : > { %p3332_p0 = scmp.ge.s32.totalorder %s3919_s27, 1  ;;  %p803_p1 = scmp.lt.s32.totalorder %s3919_s27, 3 }
  0x19   : > { %p804_p2 = pnand %p3332_p0, %p803_p1 }
  0x1a   : > { %p909_p3 = scmp.lt.s32.totalorder (!%p804_p2), %s4074_s3, 1  ;;  %s4694_s27 = sld [smem:[#allocation10_spill]] (!%p804_p2) }
  0x1b   : > { %807 = sbr.rel (%p804_p2) target bundleno = 5298 (0x14b2), region = 124  ;;  %s4695_s25 = sld [smem:[#allocation11_spill]] (!%p804_p2) }
  0x1c   : > { %s4696_s4 = sld [smem:[#allocation13_spill]] (!%p804_p2)  ;;  %s4697_s9 = sld [smem:[#allocation12_spill]] (!%p804_p2) }
  0x1d   : > { %s4698_s6 = sld [smem:[#allocation14_spill]] (!%p804_p2)  ;;  %p3343_p4 = scmp.ne.s32.totalorder (!%p804_p2), %s4074_s3, 0 }
  0x22   : > { %s4080_s7 = scalar_select %p909_p3, %s4074_s3, 1 }
  0x23   : > { %s4699_s1 = sld [smem:[#allocation5_spill]] (!%p3343_p4)  ;;  %s4700_s8 = sld [smem:[#allocation4_spill]] (!%p3343_p4)  ;;  %vm1505_vm0 = vcmask (!%p3343_p4), 523264  }
  0x24   : > { %s3478_s5 = sshll.u32 %s4080_s7, 6  ;;  %s3335_s10 = sshll.u32 %s4080_s7, 1 }
  0x25   : > { %s4095_s28 = scalar_lea.vmem %s4694_s27, %s3478_s5  ;;  %s4100_s23 = scalar_lea.vmem %s4695_s25, %s3335_s10 }
  0x26   : > { %s3479_s24 = sshll.u32 %s4080_s7, 5  ;;  %s931_s29 = scalar_lea.vmem %s4696_s4, %s4080_s7 }
  0x27   : > { %s4110_s30 = scalar_lea.vmem %s4697_s9, %s3479_s24  ;;  %s934_s27 = scalar_lea.vmem %s4698_s6, %s4080_s7 }
  0x28   : > { %s937_s26 = scalar_lea.vmem %s4647_s11, %s4080_s7  ;;  %s4123_s20 = scalar_lea.vmem %s4648_s12, %s3478_s5 }
  0x29   : > { %s4128_s4 = scalar_lea.vmem %s4649_s13, %s3335_s10  ;;  %s3481_s19 = sshll.u32 %s4080_s7, 7  ;;  %v3739_v0 = vld [vmem:[%s4699_s1 + $0x40] sm:$0xff] (!%p3343_p4)   ;;  %v3743_v4 = vld [vmem:[%s4699_s1 + $0x48] sm:$0xff] (!%p3343_p4)   ;;  %v3747_v8 = vld [vmem:[%s4699_s1 + $0x50] sm:$0xff] (!%p3343_p4)  }
  0x2a   : > { %s4134_s17 = scalar_lea.vmem %s4650_s14, %s3481_s19  ;;  %s954_s16 = scalar_lea.vmem %s4651_s15, %s4080_s7  ;;  %v3740_v1 = vld [vmem:[%s4699_s1] sm:$0xff] (!%p3343_p4)   ;;  %3482 = vmatprep.subr.bf16.mxu0 (!%p3343_p4), %v3739_v0  ;;  %v3744_v5 = vld [vmem:[%s4699_s1 + $0x8] sm:$0xff] (!%p3343_p4)   ;;  %v3748_v9 = vld [vmem:[%s4699_s1 + $0x10] sm:$0xff] (!%p3343_p4)  }
  0x2b   : > { %959 = sbr.rel (%p3343_p4) target bundleno = 326 (0x146), region = 128  ;;  %v3741_v2 = vld [vmem:[%s4699_s1 + $0xc0] sm:$0xff] (!%p3343_p4)   ;;  %3483 = vmatpush3.bf16.msra.mxu0 (!%p3343_p4), %v3740_v1  ;;  %v3745_v6 = vld [vmem:[%s4699_s1 + $0xc8] sm:$0xff] (!%p3343_p4)   ;;  %v3749_v10 = vld [vmem:[%s4699_s1 + $0xd0] sm:$0xff] (!%p3343_p4)   ;;  %s4701_s19 = sld [smem:[#allocation6_spill]] (!%p3343_p4) }
  0x2c   : > { %v3742_v3 = vld [vmem:[%s4699_s1 + $0x80] sm:$0xff] (!%p3343_p4)   ;;  %3504 = vmatprep.subr.bf16.mxu1 (!%p3343_p4), %v3741_v2  ;;  %3484 = vmatprep.subr.bf16.mxu0 (!%p3343_p4), %v3743_v4  ;;  %v3746_v7 = vld [vmem:[%s4699_s1 + $0x88] sm:$0xff] (!%p3343_p4)   ;;  %v3750_v11 = vld [vmem:[%s4699_s1 + $0x90] sm:$0xff] (!%p3343_p4)  }
  0x2d   : > { %3505 = vmatpush3.bf16.msra.mxu1 (!%p3343_p4), %v3742_v3  ;;  %v3751_v12 = vld [vmem:[%s4699_s1 + $0x58] sm:$0xff] (!%p3343_p4)   ;;  %v3755_v16 = vld [vmem:[%s4699_s1 + $0x60] sm:$0xff] (!%p3343_p4)   ;;  %v3759_v20 = vld [vmem:[%s4699_s1 + $0x68] sm:$0xff] (!%p3343_p4)  }
  0x2e   : > { %3506 = vmatprep.subr.bf16.mxu1 (!%p3343_p4), %v3745_v6  ;;  %v3752_v13 = vld [vmem:[%s4699_s1 + $0x18] sm:$0xff] (!%p3343_p4)   ;;  %v3756_v17 = vld [vmem:[%s4699_s1 + $0x20] sm:$0xff] (!%p3343_p4)   ;;  %v3760_v21 = vld [vmem:[%s4699_s1 + $0x28] sm:$0xff] (!%p3343_p4)  }
  0x2f   : > { %3485 = vmatpush3.bf16.msra.mxu0 (!%p3343_p4), %v3744_v5  ;;  %v3753_v14 = vld [vmem:[%s4699_s1 + $0xd8] sm:$0xff] (!%p3343_p4)   ;;  %v3757_v18 = vld [vmem:[%s4699_s1 + $0xe0] sm:$0xff] (!%p3343_p4)   ;;  %v3761_v22 = vld [vmem:[%s4699_s1 + $0xe8] sm:$0xff] (!%p3343_p4)  }
  0x30   : > { %3486 = vmatprep.subr.bf16.mxu0 (!%p3343_p4), %v3747_v8  ;;  %v3754_v15 = vld [vmem:[%s4699_s1 + $0x98] sm:$0xff] (!%p3343_p4)   ;;  %v3758_v19 = vld [vmem:[%s4699_s1 + $0xa0] sm:$0xff] (!%p3343_p4)   ;;  %v3762_v23 = vld [vmem:[%s4699_s1 + $0xa8] sm:$0xff] (!%p3343_p4)  }
  0x31   : > { %3507 = vmatpush3.bf16.msra.mxu1 (!%p3343_p4), %v3746_v7  ;;  %v3763_v24 = vld [vmem:[%s4699_s1 + $0x70] sm:$0xff] (!%p3343_p4)   ;;  %v3767_v28 = vld [vmem:[%s4699_s1 + $0x78] sm:$0xff] (!%p3343_p4)   ;;  %v3774_v34 = vld [vmem:[%s4699_s1 + $0x140] sm:$0xff] (!%p3343_p4)  }
  0x32   : > { %3508 = vmatprep.subr.bf16.mxu1 %v3749_v10  ;;  %v3764_v25 = vld [vmem:[%s4699_s1 + $0x30] sm:$0xff]   ;;  %v3768_v29 = vld [vmem:[%s4699_s1 + $0x38] sm:$0xff]   ;;  %v3775_v35 = vld [vmem:[%s4700_s8 + $0x8] ss:$24 sps:$4 sm:$0xff]  }
  0x33   : > { %3487 = vmatpush3.bf16.msra.mxu0 %v3748_v9  ;;  %v3765_v26 = vld [vmem:[%s4699_s1 + $0xf0] sm:$0xff]   ;;  %v3769_v30 = vld [vmem:[%s4699_s1 + $0xf8] sm:$0xff]   ;;  %v3777_v36 = vld [vmem:[%s4700_s8 + $0xc] ss:$24 sps:$4 sm:$0xff]  }
  0x34   : > { %3488 = vmatprep.subr.bf16.mxu0 %v3751_v12  ;;  %v3766_v27 = vld [vmem:[%s4699_s1 + $0xb0] sm:$0xff]   ;;  %v3770_v31 = vld [vmem:[%s4700_s8] ss:$24 sps:$4 sm:$0xff]   ;;  %v3772_v32 = vld [vmem:[%s4700_s8 + $0x4] ss:$24 sps:$4 sm:$0xff]   ;;  %1455 = vmatprep.mubr.bf16.mxu1 %v3777_v36 }
  0x35   : > { %3509 = vmatpush3.bf16.msra.mxu1 %v3750_v11  ;;  %v3773_v33 = vld [vmem:[%s4699_s1 + $0xb8] sm:$0xff]   ;;  %1414 = vmatprep.mubr.bf16.mxu0 %v3772_v32  ;;  %v3778_v37 = vld [vmem:[%s4699_s1 + $0x100] sm:$0xff]   ;;  %v3779_v38 = vld [vmem:[%s4699_s1 + $0x148] sm:$0xff]  }
  0x36   : > { %3510 = vmatprep.subr.bf16.mxu1 %v3753_v14  ;;  %v3780_v39 = vld [vmem:[%s4699_s1 + $0x108] sm:$0xff]   ;;  %v3781_v40 = vld [vmem:[%s4699_s1 + $0x150] sm:$0xff]   ;;  %v3783_v42 = vld [vmem:[%s4699_s1 + $0x158] sm:$0xff]  }
  0x37   : > { %3489 = vmatpush3.bf16.msra.mxu0 %v3752_v13  ;;  %v3782_v41 = vld [vmem:[%s4699_s1 + $0x110] sm:$0xff]   ;;  %v3784_v43 = vld [vmem:[%s4699_s1 + $0x118] sm:$0xff]   ;;  %v3785_v44 = vld [vmem:[%s4699_s1 + $0x160] sm:$0xff]  }
  0x38   : > { %3490 = vmatprep.subr.bf16.mxu0 %v3755_v16  ;;  %v3786_v45 = vld [vmem:[%s4699_s1 + $0x120] sm:$0xff]   ;;  %v3787_v46 = vld [vmem:[%s4699_s1 + $0x168] sm:$0xff]   ;;  %v3789_v49 = vld [vmem:[%s4699_s1 + $0x170] sm:$0xff]  }
  0x39   : > { %3511 = vmatpush3.bf16.msra.mxu1 %v3754_v15  ;;  %v3795_v47 = vld [vmem:[%s4700_s8 + $0x14] ss:$24 sps:$4 sm:$0xff]   ;;  %v3791_v51 = vld [vmem:[%s4699_s1 + $0x178] sm:$0xff]   ;;  %v3793_v53 = vld [vmem:[%s4700_s8 + $0x10] ss:$24 sps:$4 sm:$0xff]  }
  0x3a   : > { %3512 = vmatprep.subr.bf16.mxu1 %v3757_v18  ;;  %v3788_v48 = vld [vmem:[%s4699_s1 + $0x128] sm:$0xff]   ;;  %v3790_v50 = vld [vmem:[%s4699_s1 + $0x130] sm:$0xff]   ;;  %v3792_v52 = vld [vmem:[%s4699_s1 + $0x138] sm:$0xff]  }
  0x3b   : > { %3491 = vmatpush3.bf16.msra.mxu0 %v3756_v17  ;;  %v1062_v55 = vld [vmem:[%s4701_s19] sm:$0xff]  ;;  %v1063_v60 = vld [vmem:[%s4701_s19 + $0x8] sm:$0xff] }
  0x3c   : > { %3492 = vmatprep.subr.bf16.mxu0 %v3759_v20 }
  0x3d   : > { %3513 = vmatpush3.bf16.msra.mxu1 %v3758_v19 }
  0x3e   : > { %3514 = vmatprep.subr.bf16.mxu1 %v3761_v22 }
  0x3f   : > { %3493 = vmatpush3.bf16.msra.mxu0 %v3760_v21 }
  0x40   : > { %3494 = vmatprep.subr.bf16.mxu0 %v3763_v24 }
  0x41   : > { %3515 = vmatpush3.bf16.msra.mxu1 %v3762_v23 }
  0x42   : > { %3516 = vmatprep.subr.bf16.mxu1 %v3765_v26 }
  0x43   : > { %3495 = vmatpush3.bf16.msra.mxu0 %v3764_v25 }
  0x44   : > { %3496 = vmatprep.subr.bf16.mxu0 %v3767_v28 }
  0x45   : > { %3517 = vmatpush3.bf16.msra.mxu1 %v3766_v27 }
  0x46   : > { %3518 = vmatprep.subr.bf16.mxu1 %v3769_v30 }
  0x47   : > { %3497 = vmatpush3.bf16.msra.mxu0 %v3768_v29 }
  0x48   : > { %3526 = vmatprep.subr.bf16.mxu0 %v3774_v34 }
  0x49   : > { %3519 = vmatpush3.bf16.msra.mxu1 %v3773_v33 }
  0x4a   : > { %1415 = vmatmul.mubr.bf16.vlgmr.msra.gmra.mrb[0].mxu0 %v3770_v31 }
  0x4b   : > { %3527 = vmatpush3.bf16.msra.mxu0 %v3778_v37  ;;  %1496 = vmatprep.mubr.bf16.mxu0 %v3795_v47 }
  0x4c   : > { %1456 = vmatmul.mubr.bf16.vlgmr.msra.gmra.mrb[0].mxu1 %v3775_v35  ;;  %3528 = vmatprep.subr.bf16.mxu0 %v3779_v38 }
  0x4f   : > { %3529 = vmatpush3.bf16.msra.mxu0 %v3780_v39 }
  0x50   : > { %3530 = vmatprep.subr.bf16.mxu0 %v3781_v40 }
  0x53   : > { %3531 = vmatpush3.bf16.msra.mxu0 %v3782_v41 }
  0x54   : > { %3532 = vmatprep.subr.bf16.mxu0 %v3783_v42 }
  0x57   : > { %3533 = vmatpush3.bf16.msra.mxu0 %v3784_v43 }
  0x58   : > { %3534 = vmatprep.subr.bf16.mxu0 %v3785_v44 }
  0x5b   : > { %3535 = vmatpush3.bf16.msra.mxu0 %v3786_v45 }
  0x5c   : > { %3536 = vmatprep.subr.bf16.mxu0 %v3787_v46 }
  0x5f   : > { %3537 = vmatpush3.bf16.msra.mxu0 %v3788_v48 }
  0x60   : > { %3538 = vmatprep.subr.bf16.mxu0 %v3789_v49 }
  0x63   : > { %3539 = vmatpush3.bf16.msra.mxu0 %v3790_v50 }
  0x64   : > { %3540 = vmatprep.subr.bf16.mxu0 %v3791_v51 }
  0x67   : > { %3541 = vmatpush3.bf16.msra.mxu0 %v3792_v52 }
  0x6a   : > { %1497 = vmatmul.mubr.bf16.vlgmr.msra.gmra.mrb[4].mxu0 %v3793_v53 }
 0x11d   : > { %v3498_v54 = vpop.f32.mrb[0].mxu0 }
 0x11e   : > { %v3499_v56 = vpop.f32.mrb[1].mxu0 }
 0x11f   : > { %v3500_v57 = vadd.f32 %v3499_v56, %v3498_v54  ;;  %v3501_v58 = vpop.f32.mrb[2].mxu0  ;;  %v3520_v59 = vpop.f32.mrb[0].mxu1 }
 0x120   : > { %v3502_v61 = vpop.f32.mrb[3].mxu0  ;;  %v3521_v0 = vpop.f32.mrb[1].mxu1 }
 0x121   : > { %v1417_v62 = vadd.f32 %v3500_v57, %v1062_v55  ;;  %v3503_v63 = vadd.f32 %v3502_v61, %v3501_v58  ;;  %v3522_v1 = vadd.f32 %v3521_v0, %v3520_v59  ;;  %v3523_v2 = vpop.f32.mrb[2].mxu1 }
 0x122   : > { %v3524_v4 = vpop.f32.mrb[3].mxu1 }
 0x123   : > { %v1420_v3 = vadd.f32 %v3503_v63, %v1063_v60  ;;  %v1458_v5 = vadd.f32 %v3522_v1, %v1417_v62  ;;  %v3525_v6 = vadd.f32 %v3524_v4, %v3523_v2 }
 0x125   : > { %v1461_v7 = vadd.f32 %v3525_v6, %v1420_v3 }
 0x13d   : > { %v3542_v8 = vpop.f32.mrb[4].mxu0 }
 0x13e   : > { %v3543_v9 = vpop.f32.mrb[5].mxu0 }
 0x13f   : > { %v3544_v10 = vadd.f32 %v3543_v9, %v3542_v8  ;;  %v3545_v11 = vpop.f32.mrb[6].mxu0 }
 0x140   : > { %v3546_v12 = vpop.f32.mrb[7].mxu0 }
 0x141   : > { %v1499_v13 = vadd.f32 %v3544_v10, %v1458_v5  ;;  %v3547_v14 = vadd.f32 %v3546_v12, %v3545_v11 }
 0x143   : > { %1506 = vst.msk [vmem:[#allocation2] sm:$0xff] %vm1505_vm0, %v1499_v13  ;;  %v1502_v15 = vadd.f32 %v3547_v14, %v1461_v7 }
 0x145   : > { %1507 = vst.msk [vmem:[#allocation2 + $0x8] sm:$0xff] %vm1505_vm0, %v1502_v15 }
 0x146 PF: > { %vm1512_vm1 = vcmask 523264   ;;  %v3796_v30 = vld [vmem:[%s4095_s28 + $0x4] ss:$8 sps:$4 sm:$0xff]   ;;  %v3798_v31 = vld [vmem:[%s4095_s28] ss:$8 sps:$4 sm:$0xff]   ;;  %v3921_v38 = vmov 0   ;;  %v1567_v57 = vlaneseq }
 0x147   : > { %1620 = vmatprep.subr.bf16.mxu0 %v3796_v30  ;;  %v3799_v32 = vld [vmem:[%s4095_s28 + $0x14] ss:$8 sps:$4 sm:$0xff]   ;;  %v3801_v33 = vld [vmem:[%s4095_s28 + $0x10] ss:$8 sps:$4 sm:$0xff]   ;;  %v3802_v34 = vld [vmem:[%s4095_s28 + $0x24] ss:$8 sps:$4 sm:$0xff]   ;;  %1652 = vmatprep.mubr.bf16.mxu0 %v3921_v38 }
 0x148   : > { %1621 = vmatpush1.bf16.msra.mxu0 %v3798_v31  ;;  %v3804_v35 = vld [vmem:[%s4095_s28 + $0x20] ss:$8 sps:$4 sm:$0xff]   ;;  %v3805_v36 = vld [vmem:[%s4095_s28 + $0x34] ss:$8 sps:$4 sm:$0xff]   ;;  %v3807_v37 = vld [vmem:[%s4095_s28 + $0x30] ss:$8 sps:$4 sm:$0xff]  }
 0x149   : > { %1622 = vmatprep.subr.bf16.mxu0 %v3799_v32  ;;  %s4702_s5 = sld [smem:[#allocation8_spill]]  ;;  %s4704_s10 = sld [smem:[#allocation9_spill]]  ;;  %v3922_v56 = vmov 0.0   ;;  %v4344_v58 = vshrl.u32 %v1567_v57, 7  ;;  %v1565_v60 = vld [vmem:[%s4100_s23] sm:$0x3] }
 0x14a   : > { %v4309_v16 = vld [vmem:[#allocation2] sm:$0xff]  ;;  %3615 = vmatprep.subr.bf16.mxu1 %v3922_v56  ;;  %vm3923_vm2 = vmmov 0   ;;  %s3924_s23 = smov 48   ;;  %s3925_s22 = smov 64   ;;  %vm1668_vm3 = vcmask 130048  }
 0x14b   : > { %v1513_v18 = vsel %vm1512_vm1, %v4309_v16, 0.0  ;;  %v1569_v59 = vsub.s32 0, %v4344_v58  ;;  %v1573_v61 = vsub.s32 1, %v4344_v58  ;;  %3617 = vmatprep.mubr.msk.bf16.mxu1 %vm3923_vm2, %v3922_v56  ;;  %s3926_s24 = smov 112   ;;  %s4706_s9 = sld [smem:[#allocation7_spill]] }
 0x14c   : > { %v4311_v17 = vld [vmem:[#allocation2 + $0x8] sm:$0xff]  ;;  %1514 = vadd.xlane.f32.xlu0 %v1513_v18  ;;  %1623 = vmatpush1.bf16.msra.mxu0 %v3801_v33  ;;  %s3927_s6 = smov 96   ;;  %s3928_s25 = smov 32  }
 0x14d   : > { %v1516_v19 = vsel %vm1512_vm1, %v4311_v17, 0.0  ;;  %1624 = vmatprep.subr.bf16.mxu0 %v3802_v34  ;;  %v1570_v62 = vrot.slane %v1565_v60, %v1569_v59  ;;  %v1574_v0 = vrot.slane %v1565_v60, %v1573_v61  ;;  %p3454_p5 = scmp.ne.s32.totalorder %s4074_s3, 1 }
 0x14e   : > { %vm2840_vm8 = vcmask (!%p3454_p5), 1040384   ;;  %vm2844_vm9 = vcmask (!%p3454_p5), 517120   ;;  %vm3932_vm10 = vmmov (!%p3454_p5), 0   ;;  %s4711_s2 = sld [smem:[#allocation16_spill]] (!%p3454_p5)  ;;  %vm3068_vm13 = vcmask (!%p3454_p5), 261120   ;;  %s4715_s0 = sld [smem:[#allocation22_spill]] (!%p3454_p5) }
 0x14f   : > { %s4703_s28 = scalar_lea.vmem %s4702_s5, %s4080_s7  ;;  %s4705_s21 = scalar_lea.vmem %s4704_s10, %s4080_s7 }
 0x150   : > { %1517 = vadd.xlane.f32.xlu0 %v1516_v19  ;;  %1625 = vmatpush1.bf16.msra.mxu0 %v3804_v35  ;;  %v3398_v47 = vld [vmem:[%s4703_s28] ss:$0 sm:$0xff]  ;;  %s3929_s10 = smov 16  }
 0x151   : > { %1626 = vmatprep.subr.bf16.mxu0 %v3805_v36  ;;  %v3399_v51 = vld [vmem:[%s4705_s21] ss:$0 sm:$0xff]  ;;  %s3930_s21 = smov 80  }
 0x152   : > { %v4381_v18 = vld [vmem:[%s4706_s9] sm:$0xff] }
 0x154   : > { %1627 = vmatpush1.bf16.msra.mxu0 %v3807_v37 }
 0x155   : > { %3609 = vmatprep.subr.bf16.mxu0 %v3922_v56 }
 0x1d9   : > { %v1515_v20 = vpop.xlane.xlu0 %1514 }
 0x1da   : > { %v1520_v21 = vmul.f32 0.015625, %v1515_v20 }
 0x1dc   : > { %v1522_v22 = vsub.f32 %v4309_v16, %v1520_v21 }
 0x1dd   : > { %v1518_v23 = vpop.xlane.xlu0 %1517 }
 0x1de   : > { %v1521_v24 = vmul.f32 0.015625, %v1518_v23  ;;  %v1524_v25 = vmul.f32 %v1522_v22, %v1522_v22 }
 0x1e0   : > { %v1523_v26 = vsub.f32 %v4311_v17, %v1521_v24  ;;  %v1526_v27 = vsel %vm1512_vm1, %v1524_v25, 0.0 }
 0x1e1   : > { %1527 = vadd.xlane.f32.xlu1 %v1526_v27 }
 0x1e2   : > { %v1525_v28 = vmul.f32 %v1523_v26, %v1523_v26 }
 0x1e4   : > { %v1529_v29 = vsel %vm1512_vm1, %v1525_v28, 0.0 }
 0x1e5   : > { %1530 = vadd.xlane.f32.xlu1 %v1529_v29 }
 0x26e   : > { %v1528_v39 = vpop.xlane.xlu1 %1527 }
 0x26f   : > { %v1532_v40 = vmul.f32 0.015625, %v1528_v39 }
 0x271   : > { %v1534_v41 = vadd.f32 1e-12, %v1532_v40 }
 0x272   : > { %v1531_v42 = vpop.xlane.xlu1 %1530 }
 0x273   : > { %3840 = vrsqrt.f32 %v1534_v41  ;;  %v1533_v43 = vmul.f32 0.015625, %v1531_v42 }
 0x275   : > { %v1535_v44 = vadd.f32 1e-12, %v1533_v43 }
 0x277   : > { %3842 = vrsqrt.f32 %v1535_v44 }
 0x27d   : > { %v3841_v45 = vpop.eup %3840 }
 0x27e   : > { %v1538_v46 = vmul.f32 %v3841_v45, %v1522_v22  ;;  %v4386_v22 = vld [vmem:[%s4706_s9 + $0x8] sm:$0xff] }
 0x280   : > { %v1546_v50 = vmul.f32 %v3398_v47, %v1538_v46 }
 0x281   : > { %v3843_v48 = vpop.eup %3842 }
 0x282   : > { %v1539_v49 = vmul.f32 %v3843_v48, %v1523_v26  ;;  %v1554_v53 = vadd.f32 %v3399_v51, %v1546_v50 }
 0x284   : > { %v1547_v52 = vmul.f32 %v3398_v47, %v1539_v49 }
 0x286   : > { %v1555_v54 = vadd.f32 %v3399_v51, %v1547_v52 }
 0x288   : > { %v1556_v55 = vpack.c.bf16 %v1555_v54, %v1554_v53 }
 0x28a   : > { %3408 = vmatmul.mubr.msk.bf16.vlgmr.msra.gmra.mrb[0].mxu0 %vm1512_vm1, %v1556_v55 }
 0x28b   : > { %3611 = vmatprep.mubr.msk.bf16.mxu0 %vm3923_vm2, %v3922_v56 }
 0x35d   : > { %v1654_v63 = vpop.f32.mrb[0].mxu0 }
 0x35e   : > { %v1656_v1 = vpop.f32.mrb[1].mxu0  ;;  %v1655_v3 = vadd.f32 %v1654_v63, %v1570_v62 }
 0x35f   : > { %v1658_v2 = vpop.f32.mrb[2].mxu0  ;;  %v1657_v6 = vadd.f32 %v1656_v1, %v1574_v0 }
 0x360   : > { %v1659_v4 = vadd.f32 %v1658_v2, %v1570_v62  ;;  %v1660_v5 = vpop.f32.mrb[3].mxu0 }
 0x361   : > { %v1661_v7 = vadd.f32 %v1660_v5, %v1574_v0 }
 0x362   : > { %v4357_v8 = vpack.c.bf16 %v1659_v4, %v1655_v3 }
 0x363   : > { %v4359_v9 = vpack.c.bf16 %v1661_v7, %v1657_v6 }
 0x364   : > { %1794 = vrot.lane.b32.xlu1 %v4357_v8, %s3924_s23  ;;  %1666 = vrot.lane.b32.xlu0 %v4357_v8, %s3925_s22  ;;  %s4714_s22 = sld [smem:[#allocation19_spill]] (!%p3454_p5) }
 0x365   : > { %3616 = vmatpush3.bf16.msra.mxu1 %v4359_v9 }
 0x366   : > { %3627 = vmatprep.subr.bf16.mxu1 %v3922_v56 }
 0x368   : > { %1792 = vrot.lane.b32.xlu1 %v4357_v8, %s3926_s24 }
 0x3d6   : > { %v1667_v10 = vpop.permute.xlu0 %1666  ;;  %v1795_v12 = vpop.permute.xlu1 %1794 }
 0x3d7   : > { %v1673_v11 = vsel %vm1668_vm3, %v1667_v10, 0  ;;  %v1800_v13 = vsel %vm1668_vm3, %v1795_v12, 0 }
 0x3d8   : > { %3610 = vmatpush3.bf16.xpose.msra.mxu0 %v1673_v11 }
 0x3d9   : > { %3621 = vmatprep.subr.bf16.mxu0 %v3922_v56 }
 0x3da   : > { %v1793_v14 = vpop.permute.xlu1 %1792 }
 0x3df   : > { %3612 = vmatmul.mubr.msk.bf16.vlgmr.msra.gmra.mrb[4].mxu0 %vm1668_vm3, %v4357_v8 }
 0x3e0   : > { %3622 = vmatpush3.bf16.xpose.msra.mxu0 %v1800_v13  ;;  %3623 = vmatprep.mubr.msk.bf16.mxu0 %vm3923_vm2, %v3922_v56 }
 0x3e1   : > { %3633 = vmatprep.subr.bf16.mxu0 %v3922_v56 }
 0x3e7   : > { %3624 = vmatmul.mubr.msk.bf16.vlgmr.msra.gmra.mrb[8].mxu0 %vm1668_vm3, %v1793_v14 }
 0x3e8   : > { %3635 = vmatprep.mubr.msk.bf16.mxu0 %vm3923_vm2, %v3922_v56 }
 0x4b2   : > { %v1709_v15 = vpop.f32.mrb[4].mxu0 }
 0x4b3   : > { %v1716_v19 = vmul.f32 0.25, %v1709_v15  ;;  %v3613_v20 = vpop.f32.mrb[5].mxu0 }
 0x4b4   : > { %v1712_v21 = vpop.f32.mrb[6].mxu0 }
 0x4b5   : > { %v1717_v23 = vmul.f32 0.25, %v1712_v21  ;;  %v3614_v24 = vpop.f32.mrb[7].mxu0  ;;  %v1720_v25 = vadd.f32 %v4381_v18, %v1716_v19  ;;  %v3808_v21 = vld [vmem:[%s4110_s30] sm:$0xff]  }
 0x4b7   : > { %v1722_v26 = vsel %vm1668_vm3, %v1720_v25, -inf  ;;  %v1721_v27 = vadd.f32 %v4386_v22, %v1717_v23  ;;  %v3809_v23 = vld [vmem:[%s4110_s30 + $0x8] sm:$0xff]  }
 0x4b8   : > { %1723 = vmax.xlane.f32.xlu1 %v1722_v26  ;;  %3634 = vmatpush3.bf16.msra.mxu0 %v3809_v23 }
 0x4b9   : > { %v1725_v28 = vsel %vm1668_vm3, %v1721_v27, -inf  ;;  %3645 = vmatprep.subr.bf16.mxu0 %v3922_v56 }
 0x4ba   : > { %1726 = vmax.xlane.f32.xlu0 %v1725_v28  ;;  %v1836_v29 = vpop.f32.mrb[8].mxu0 }
 0x4bb   : > { %v1843_v30 = vmul.f32 0.25, %v1836_v29  ;;  %v3625_v31 = vpop.f32.mrb[9].mxu0 }
 0x4bc   : > { %v1839_v32 = vpop.f32.mrb[10].mxu0 }
 0x4bd   : > { %v1844_v33 = vmul.f32 0.25, %v1839_v32  ;;  %v3626_v34 = vpop.f32.mrb[11].mxu0  ;;  %v1845_v35 = vadd.f32 %v1843_v30, %v4381_v18 }
 0x4bf   : > { %v1847_v36 = vsel %vm1668_vm3, %v1845_v35, -inf  ;;  %v1846_v37 = vadd.f32 %v1844_v33, %v4386_v22 }
 0x4c0   : > { %1848 = vmax.xlane.f32.xlu0 %v1847_v36 }
 0x4c1   : > { %v1850_v39 = vsel %vm1668_vm3, %v1846_v37, -inf }
 0x4c4   : > { %1851 = vmax.xlane.f32.xlu0 %v1850_v39 }
 0x545   : > { %v1724_v40 = vpop.xlane.xlu1 %1723 }
 0x546   : > { %v1728_v41 = vsub.f32 %v1720_v25, %v1724_v40 }
 0x547   : > { %v1727_v42 = vpop.xlane.xlu0 %1726 }
 0x548   : > { %v1730_v43 = vmul.f32 1.442695, %v1728_v41  ;;  %v1729_v44 = vsub.f32 %v1721_v27, %v1727_v42 }
 0x54a   : > { %3844 = vpow2.f32 %v1730_v43  ;;  %v1732_v45 = vmul.f32 1.442695, %v1729_v44 }
 0x54c   : > { %3846 = vpow2.f32 %v1732_v45 }
 0x54d   : > { %v1849_v46 = vpop.xlane.xlu0 %1848 }
 0x54e   : > { %v1853_v47 = vsub.f32 %v1845_v35, %v1849_v46 }
 0x550   : > { %v1855_v48 = vmul.f32 1.442695, %v1853_v47 }
 0x551   : > { %v1852_v49 = vpop.xlane.xlu0 %1851 }
 0x552   : > { %3848 = vpow2.f32 %v1855_v48  ;;  %v1854_v50 = vsub.f32 %v1846_v37, %v1852_v49 }
 0x554   : > { %v3845_v51 = vpop.eup %3844  ;;  %v1857_v52 = vmul.f32 1.442695, %v1854_v50 }
 0x555   : > { %v1734_v53 = vsel %vm1668_vm3, %v3845_v51, 0.0 }
 0x556   : > { %v3847_v54 = vpop.eup %3846  ;;  %3850 = vpow2.f32 %v1857_v52  ;;  %1735 = vadd.xlane.f32.xlu1 %v1734_v53 }
 0x557   : > { %v1737_v55 = vsel %vm1668_vm3, %v3847_v54, 0.0 }
 0x558   : > { %1738 = vadd.xlane.f32.xlu0 %v1737_v55 }
 0x55c   : > { %v3849_v60 = vpop.eup %3848 }
 0x55d   : > { %v1859_v62 = vsel %vm1668_vm3, %v3849_v60, 0.0 }
 0x55e   : > { %1860 = vadd.xlane.f32.xlu1 %v1859_v62 }
 0x560   : > { %v3851_v63 = vpop.eup %3850 }
 0x561   : > { %v1862_v0 = vsel %vm1668_vm3, %v3851_v63, 0.0 }
 0x562   : > { %1863 = vadd.xlane.f32.xlu0 %v1862_v0 }
 0x56f   : > { %1871 = vrot.lane.b32.xlu1 %v4359_v9, %s3926_s24  ;;  %s4710_s24 = sld [smem:[#allocation15_spill]] (!%p3454_p5) }
 0x573   : > { %2021 = vrot.lane.b32.xlu1 %v4357_v8, %s3927_s6 }
 0x578   : > { %2023 = vrot.lane.b32.xlu0 %v4357_v8, %s3928_s25 }
 0x5e3   : > { %v1736_v1 = vpop.xlane.xlu1 %1735 }
 0x5e4   : > { %3852 = vrcp.f32 %v1736_v1 }
 0x5e5   : > { %v1739_v2 = vpop.xlane.xlu0 %1738 }
 0x5e6   : > { %3854 = vrcp.f32 %v1739_v2 }
 0x5eb   : > { %v1861_v3 = vpop.xlane.xlu1 %1860 }
 0x5ec   : > { %3856 = vrcp.f32 %v1861_v3 }
 0x5ee   : > { %v3853_v4 = vpop.eup %3852 }
 0x5ef   : > { %v1864_v5 = vpop.xlane.xlu0 %1863  ;;  %v1742_v7 = vmul.f32 %v3853_v4, %v3845_v51  ;;  %v1872_v12 = vpop.permute.xlu1 %1871 }
 0x5f0   : > { %v3855_v6 = vpop.eup %3854  ;;  %3858 = vrcp.f32 %v1864_v5 }
 0x5f1   : > { %v1743_v10 = vmul.f32 %v3855_v6, %v3847_v54 }
 0x5f3   : > { %v1744_v11 = vpack.c.bf16 %v1743_v10, %v1742_v7  ;;  %v2024_v31 = vpop.permute.xlu0 %2023  ;;  %v2022_v36 = vpop.permute.xlu1 %2021 }
 0x5f4   : > { %v2029_v35 = vsel %vm1668_vm3, %v2024_v31, 0 }
 0x5f5   : > { %3618 = vmatmul.mubr.msk.bf16.vlgmr.msra.gmra.mrb[0].mxu1 %vm1668_vm3, %v1744_v11 }
 0x5f6   : > { %3628 = vmatpush3.bf16.msra.mxu1 %v1872_v12  ;;  %3629 = vmatprep.mubr.msk.bf16.mxu1 %vm3923_vm2, %v3922_v56  ;;  %v3857_v13 = vpop.eup %3856 }
 0x5f7   : > { %3639 = vmatprep.subr.bf16.mxu1 %v3922_v56  ;;  %v1867_v15 = vmul.f32 %v3857_v13, %v3849_v60 }
 0x5fa   : > { %v3859_v14 = vpop.eup %3858 }
 0x5fb   : > { %v1868_v19 = vmul.f32 %v3859_v14, %v3851_v63 }
 0x5fd   : > { %v1869_v20 = vpack.c.bf16 %v1868_v19, %v1867_v15 }
 0x5ff   : > { %3630 = vmatmul.mubr.msk.bf16.vlgmr.msra.gmra.mrb[4].mxu1 %vm1668_vm3, %v1869_v20 }
 0x600   : > { %3641 = vmatprep.mubr.msk.bf16.mxu1 %vm3923_vm2, %v3922_v56  ;;  %3640 = vmatpush3.bf16.msra.mxu1 %v3808_v21 }
 0x601   : > { %3651 = vmatprep.subr.bf16.mxu1 %v3922_v56 }
 0x6c8   : > { %v1782_v24 = vpop.f32.mrb[0].mxu1 }
 0x6c9   : > { %v3619_v25 = vpop.f32.mrb[1].mxu1 }
 0x6ca   : > { %v1785_v26 = vpop.f32.mrb[2].mxu1  ;;  %v3810_v25 = vld [vmem:[%s4110_s30 + $0x10] sm:$0xff]  }
 0x6cb   : > { %v1789_v27 = vpack.c.bf16 %v1785_v26, %v1782_v24  ;;  %v3620_v28 = vpop.f32.mrb[3].mxu1 }
 0x6cd   : > { %3642 = vmatmul.mubr.msk.bf16.vlgmr.msra.gmra.mrb[8].mxu1 %vm1668_vm3, %v1789_v27 }
 0x6ce   : > { %3653 = vmatprep.mubr.msk.bf16.mxu1 %vm3923_vm2, %v3922_v56 }
 0x6d2   : > { %v1911_v29 = vpop.f32.mrb[4].mxu1 }
 0x6d3   : > { %v3631_v30 = vpop.f32.mrb[5].mxu1 }
 0x6d4   : > { %v1914_v32 = vpop.f32.mrb[6].mxu1 }
 0x6d5   : > { %v1918_v33 = vpack.c.bf16 %v1914_v32, %v1911_v29  ;;  %v3632_v34 = vpop.f32.mrb[7].mxu1 }
 0x6d7   : > { %3636 = vmatmul.mubr.msk.bf16.vlgmr.msra.gmra.mrb[12].mxu0 %vm1668_vm3, %v1918_v33 }
 0x6d8   : > { %3646 = vmatpush3.bf16.xpose.msra.mxu0 %v2029_v35  ;;  %3647 = vmatprep.mubr.msk.bf16.mxu0 %vm3923_vm2, %v3922_v56 }
 0x6d9   : > { %3657 = vmatprep.subr.bf16.mxu0 %v3922_v56 }
 0x6df   : > { %3648 = vmatmul.mubr.msk.bf16.vlgmr.msra.gmra.mrb[16].mxu0 %vm1668_vm3, %v2022_v36 }
 0x6e0   : > { %3659 = vmatprep.mubr.msk.bf16.mxu0 %vm3923_vm2, %v3922_v56  ;;  %3658 = vmatpush3.bf16.msra.mxu0 %v3810_v25 }
 0x6e1   : > { %3669 = vmatprep.subr.bf16.mxu0 %v3922_v56 }
 0x7a0   : > { %v2014_v37 = vpop.f32.mrb[8].mxu1 }
 0x7a1   : > { %v3643_v39 = vpop.f32.mrb[9].mxu1 }
 0x7a2   : > { %v2017_v40 = vpop.f32.mrb[10].mxu1 }
 0x7a3   : > { %v3644_v41 = vpop.f32.mrb[11].mxu1 }
 0x7aa   : > { %v1964_v42 = vpop.f32.mrb[12].mxu0 }
 0x7ab   : > { %v4427_v43 = vadd.f32 %v2014_v37, %v1964_v42  ;;  %v3637_v44 = vpop.f32.mrb[13].mxu0 }
 0x7ac   : > { %v1967_v45 = vpop.f32.mrb[14].mxu0 }
 0x7ad   : > { %v4429_v46 = vadd.f32 %v2017_v40, %v1967_v45  ;;  %v3638_v47 = vpop.f32.mrb[15].mxu0 }
 0x7b2   : > { %v2065_v48 = vpop.f32.mrb[16].mxu0 }
 0x7b3   : > { %v2072_v49 = vmul.f32 0.25, %v2065_v48  ;;  %v3649_v50 = vpop.f32.mrb[17].mxu0 }
 0x7b4   : > { %v2068_v51 = vpop.f32.mrb[18].mxu0 }
 0x7b5   : > { %v2073_v52 = vmul.f32 0.25, %v2068_v51  ;;  %v3650_v53 = vpop.f32.mrb[19].mxu0  ;;  %v2074_v54 = vadd.f32 %v2072_v49, %v4381_v18 }
 0x7b7   : > { %v2076_v55 = vsel %vm1668_vm3, %v2074_v54, -inf  ;;  %v2075_v60 = vadd.f32 %v2073_v52, %v4386_v22 }
 0x7b8   : > { %2077 = vmax.xlane.f32.xlu1 %v2076_v55 }
 0x7b9   : > { %v2079_v62 = vsel %vm1668_vm3, %v2075_v60, -inf }
 0x7ba   : > { %2080 = vmax.xlane.f32.xlu0 %v2079_v62 }
 0x845   : > { %v2078_v63 = vpop.xlane.xlu1 %2077 }
 0x846   : > { %v2082_v0 = vsub.f32 %v2074_v54, %v2078_v63 }
 0x847   : > { %v2081_v1 = vpop.xlane.xlu0 %2080 }
 0x848   : > { %v2084_v2 = vmul.f32 1.442695, %v2082_v0  ;;  %v2083_v3 = vsub.f32 %v2075_v60, %v2081_v1 }
 0x84a   : > { %3860 = vpow2.f32 %v2084_v2  ;;  %v2086_v4 = vmul.f32 1.442695, %v2083_v3 }
 0x84c   : > { %3862 = vpow2.f32 %v2086_v4 }
 0x854   : > { %v3861_v5 = vpop.eup %3860 }
 0x855   : > { %v2088_v6 = vsel %vm1668_vm3, %v3861_v5, 0.0 }
 0x856   : > { %v3863_v7 = vpop.eup %3862  ;;  %2089 = vadd.xlane.f32.xlu0 %v2088_v6 }
 0x857   : > { %v2091_v10 = vsel %vm1668_vm3, %v3863_v7, 0.0 }
 0x858   : > { %2092 = vadd.xlane.f32.xlu1 %v2091_v10 }
 0x869   : > { %2203 = vrot.lane.b32.xlu1 %v4357_v8, %s3929_s10 }
 0x86c   : > { %2099 = vrot.lane.b32.xlu0 %v4359_v9, %s3927_s6  ;;  %s4713_s6 = sld [smem:[#allocation20_spill]] (!%p3454_p5) }
 0x86d   : > { %2201 = vrot.lane.b32.xlu1 %v4357_v8, %s3930_s21 }
 0x8e3   : > { %v2090_v11 = vpop.xlane.xlu0 %2089 }
 0x8e4   : > { %3864 = vrcp.f32 %v2090_v11 }
 0x8e5   : > { %v2093_v12 = vpop.xlane.xlu1 %2092 }
 0x8e6   : > { %3866 = vrcp.f32 %v2093_v12 }
 0x8e7   : > { %v2100_v13 = vpop.permute.xlu0 %2099 }
 0x8e8   : > { %3652 = vmatpush3.bf16.msra.mxu1 %v2100_v13 }
 0x8e9   : > { %3663 = vmatprep.subr.bf16.mxu1 %v3922_v56  ;;  %v2204_v21 = vpop.permute.xlu1 %2203 }
 0x8ea   : > { %v2209_v24 = vsel %vm1668_vm3, %v2204_v21, 0 }
 0x8ed   : > { %v2202_v8 = vpop.permute.xlu1 %2201 }
 0x8ee   : > { %v3865_v14 = vpop.eup %3864 }
 0x8ef   : > { %v2096_v19 = vmul.f32 %v3865_v14, %v3861_v5  ;;  %v3425_v14 = vld [vmem:[%s931_s29] ss:$0 sm:$0xff] }
 0x8f0   : > { %v3867_v15 = vpop.eup %3866 }
 0x8f1   : > { %v2097_v20 = vmul.f32 %v3867_v15, %v3863_v7 }
 0x8f3   : > { %v2098_v23 = vpack.c.bf16 %v2097_v20, %v2096_v19 }
 0x8f5   : > { %3654 = vmatmul.mubr.msk.bf16.vlgmr.msra.gmra.mrb[12].mxu1 %vm1668_vm3, %v2098_v23 }
 0x8f6   : > { %3664 = vmatpush3.bf16.xpose.msra.mxu1 %v2209_v24  ;;  %3665 = vmatprep.mubr.msk.bf16.mxu1 %vm3923_vm2, %v3922_v56 }
 0x8f7   : > { %3675 = vmatprep.subr.bf16.mxu1 %v3922_v56 }
 0x8fd   : > { %3666 = vmatmul.mubr.msk.bf16.vlgmr.msra.gmra.mrb[16].mxu1 %vm1668_vm3, %v2202_v8 }
 0x8fe   : > { %3677 = vmatprep.mubr.msk.bf16.mxu1 %vm3923_vm2, %v3922_v56 }
 0x9c8   : > { %v2139_v26 = vpop.f32.mrb[12].mxu1 }
 0x9c9   : > { %v3655_v27 = vpop.f32.mrb[13].mxu1 }
 0x9ca   : > { %v2142_v28 = vpop.f32.mrb[14].mxu1 }
 0x9cb   : > { %v2146_v29 = vpack.c.bf16 %v2142_v28, %v2139_v26  ;;  %v3656_v30 = vpop.f32.mrb[15].mxu1 }
 0x9cd   : > { %3660 = vmatmul.mubr.msk.bf16.vlgmr.msra.gmra.mrb[20].mxu0 %vm1668_vm3, %v2146_v29 }
 0x9ce   : > { %3671 = vmatprep.mubr.msk.bf16.mxu0 %vm3923_vm2, %v3922_v56 }
 0x9d0   : > { %v2245_v31 = vpop.f32.mrb[16].mxu1 }
 0x9d1   : > { %v2252_v32 = vmul.f32 0.25, %v2245_v31  ;;  %v3667_v33 = vpop.f32.mrb[17].mxu1 }
 0x9d2   : > { %v2248_v34 = vpop.f32.mrb[18].mxu1 }
 0x9d3   : > { %v2253_v35 = vmul.f32 0.25, %v2248_v34  ;;  %v3668_v36 = vpop.f32.mrb[19].mxu1  ;;  %v2254_v37 = vadd.f32 %v2252_v32, %v4381_v18  ;;  %v3814_v34 = vld [vmem:[%s4123_s20 + $0x4] ss:$8 sps:$4 sm:$0xff]  }
 0x9d4   : > { %v3817_v36 = vld [vmem:[%s4123_s20 + $0x14] ss:$8 sps:$4 sm:$0xff]  }
 0x9d5   : > { %v2256_v39 = vsel %vm1668_vm3, %v2254_v37, -inf  ;;  %v2255_v40 = vadd.f32 %v2253_v35, %v4386_v22  ;;  %v3812_v35 = vld [vmem:[%s4123_s20] ss:$8 sps:$4 sm:$0xff]  }
 0x9d6   : > { %2257 = vmax.xlane.f32.xlu1 %v2256_v39  ;;  %v3820_v39 = vld [vmem:[%s4123_s20 + $0x24] ss:$8 sps:$4 sm:$0xff]  }
 0x9d7   : > { %v2259_v41 = vsel %vm1668_vm3, %v2255_v40, -inf }
 0x9d8   : > { %2260 = vmax.xlane.f32.xlu0 %v2259_v41  ;;  %v3821_v41 = vld [vmem:[%s4123_s20 + $0x30] ss:$8 sps:$4 sm:$0xff]  }
 0x9e7   : > { %2279 = vrot.lane.b32.xlu1 %v4359_v9, %s3930_s21  ;;  %v3811_v9 = vld [vmem:[%s4110_s30 + $0x18] sm:$0xff]   ;;  %s4709_s21 = sld [smem:[#allocation18_spill]] (!%p3454_p5) }
 0x9e8   : > { %3676 = vmatpush3.bf16.msra.mxu1 %v3811_v9 }
 0xa63   : > { %v2258_v56 = vpop.xlane.xlu1 %2257 }
 0xa64   : > { %v2262_v42 = vsub.f32 %v2254_v37, %v2258_v56  ;;  %v3815_v37 = vld [vmem:[%s4123_s20 + $0x10] ss:$8 sps:$4 sm:$0xff]   ;;  %v3823_v56 = vld [vmem:[%s4123_s20 + $0x34] ss:$8 sps:$4 sm:$0xff]  }
 0xa65   : > { %v2261_v44 = vpop.xlane.xlu0 %2260 }
 0xa66   : > { %v2264_v45 = vmul.f32 1.442695, %v2262_v42  ;;  %v2263_v47 = vsub.f32 %v2255_v40, %v2261_v44  ;;  %v3818_v40 = vld [vmem:[%s4123_s20 + $0x20] ss:$8 sps:$4 sm:$0xff]  }
 0xa67   : > { %v2280_v48 = vpop.permute.xlu1 %2279 }
 0xa68   : > { %3868 = vpow2.f32 %v2264_v45  ;;  %v2266_v18 = vmul.f32 1.442695, %v2263_v47  ;;  %3670 = vmatpush3.bf16.msra.mxu0 %v2280_v48 }
 0xa69   : > { %2500 = vmatprep.subr.bf16.mxu0 %v3814_v34 }
 0xa6a   : > { %3870 = vpow2.f32 %v2266_v18 }
 0xa72   : > { %v3869_v49 = vpop.eup %3868 }
 0xa73   : > { %v2268_v22 = vsel %vm1668_vm3, %v3869_v49, 0.0 }
 0xa74   : > { %v3871_v50 = vpop.eup %3870  ;;  %2269 = vadd.xlane.f32.xlu0 %v2268_v22 }
 0xa75   : > { %v2271_v51 = vsel %vm1668_vm3, %v3871_v50, 0.0 }
 0xa78   : > { %2272 = vadd.xlane.f32.xlu0 %v2271_v51 }
 0xaa0   : > { %v2192_v52 = vpop.f32.mrb[20].mxu0 }
 0xaa1   : > { %v2199_v53 = vadd.f32 %v2192_v52, %v4427_v43  ;;  %v3661_v54 = vpop.f32.mrb[21].mxu0 }
 0xaa2   : > { %v2195_v55 = vpop.f32.mrb[22].mxu0 }
 0xaa3   : > { %v2200_v60 = vadd.f32 %v2195_v55, %v4429_v46  ;;  %v3662_v62 = vpop.f32.mrb[23].mxu0 }
 0xb01   : > { %v2270_v63 = vpop.xlane.xlu0 %2269 }
 0xb02   : > { %3872 = vrcp.f32 %v2270_v63  ;;  %v3824_v63 = vld [vmem:[%s4134_s17 + $0x40] sm:$0xff]  }
 0xb03   : > { %3572 = vmatprep.subr.bf16.mxu1 %v3824_v63 }
 0xb05   : > { %v2273_v0 = vpop.xlane.xlu0 %2272 }
 0xb06   : > { %3874 = vrcp.f32 %v2273_v0  ;;  %v3825_v0 = vld [vmem:[%s4134_s17] sm:$0xff]  }
 0xb0c   : > { %v3873_v1 = vpop.eup %3872 }
 0xb0d   : > { %v2276_v3 = vmul.f32 %v3873_v1, %v3869_v49  ;;  %v3826_v1 = vld [vmem:[%s4134_s17 + $0x48] sm:$0xff]  }
 0xb10   : > { %v3875_v2 = vpop.eup %3874 }
 0xb11   : > { %v2277_v4 = vmul.f32 %v3875_v2, %v3871_v50  ;;  %v3426_v50 = vld [vmem:[%s934_s27] ss:$0 sm:$0xff]  ;;  %v3827_v2 = vld [vmem:[%s4134_s17 + $0x8] sm:$0xff]   ;;  %s4716_s27 = sld [smem:[#allocation21_spill]] (!%p3454_p5) }
 0xb13   : > { %v2278_v5 = vpack.c.bf16 %v2277_v4, %v2276_v3  ;;  %v3828_v3 = vld [vmem:[%s4134_s17 + $0x50] sm:$0xff]  }
 0xb14   : > { %v3829_v4 = vld [vmem:[%s4134_s17 + $0x10] sm:$0xff]  }
 0xb15   : > { %3672 = vmatmul.mubr.msk.bf16.vlgmr.msra.gmra.mrb[24].mxu0 %vm1668_vm3, %v2278_v5  ;;  %v3830_v5 = vld [vmem:[%s4134_s17 + $0x58] sm:$0xff]  }
 0xb16   : > { %2532 = vmatprep.mubr.bf16.mxu0 %v3921_v38  ;;  %2501 = vmatpush1.bf16.msra.mxu0 %v3812_v35 }
 0xb17   : > { %2502 = vmatprep.subr.bf16.mxu0 %v3817_v36 }
 0xb1a   : > { %2503 = vmatpush1.bf16.msra.mxu0 %v3815_v37 }
 0xb1b   : > { %2504 = vmatprep.subr.bf16.mxu0 %v3820_v39 }
 0xb1e   : > { %2505 = vmatpush1.bf16.msra.mxu0 %v3818_v40 }
 0xb1f   : > { %2506 = vmatprep.subr.bf16.mxu0 %v3823_v56 }
 0xb22   : > { %2507 = vmatpush1.bf16.msra.mxu0 %v3821_v41 }
 0xbe8   : > { %v2319_v43 = vpop.f32.mrb[24].mxu0 }
 0xbe9   : > { %v3673_v6 = vpop.f32.mrb[25].mxu0 }
 0xbea   : > { %v2322_v7 = vpop.f32.mrb[26].mxu0  ;;  %v3832_v6 = vld [vmem:[%s4134_s17 + $0x60] sm:$0xff]  }
 0xbeb   : > { %v2326_v10 = vpack.c.bf16 %v2322_v7, %v2319_v43  ;;  %v3674_v46 = vpop.f32.mrb[27].mxu0  ;;  %v3831_v43 = vld [vmem:[%s4134_s17 + $0x18] sm:$0xff]   ;;  %v3833_v7 = vld [vmem:[%s4134_s17 + $0x20] sm:$0xff]  }
 0xbec   : > { %v3835_v46 = vld [vmem:[%s4134_s17 + $0x28] sm:$0xff]  }
 0xbed   : > { %3678 = vmatmul.mubr.msk.bf16.vlgmr.msra.gmra.mrb[20].mxu1 %vm1668_vm3, %v2326_v10  ;;  %v3834_v10 = vld [vmem:[%s4134_s17 + $0x68] sm:$0xff]  }
 0xbee   : > { %3573 = vmatpush3.bf16.msra.mxu1 %v3825_v0 }
 0xbef   : > { %3574 = vmatprep.subr.bf16.mxu1 %v3826_v1 }
 0xbf2   : > { %3575 = vmatpush3.bf16.msra.mxu1 %v3827_v2 }
 0xbf3   : > { %3576 = vmatprep.subr.bf16.mxu1 %v3828_v3 }
 0xbf6   : > { %3577 = vmatpush3.bf16.msra.mxu1 %v3829_v4 }
 0xbf7   : > { %3578 = vmatprep.subr.bf16.mxu1 %v3830_v5 }
 0xbfa   : > { %3579 = vmatpush3.bf16.msra.mxu1 %v3831_v43 }
 0xbfb   : > { %3580 = vmatprep.subr.bf16.mxu1 %v3832_v6 }
 0xbfe   : > { %3581 = vmatpush3.bf16.msra.mxu1 %v3833_v7 }
 0xbff   : > { %3582 = vmatprep.subr.bf16.mxu1 %v3834_v10 }
 0xc02   : > { %3583 = vmatpush3.bf16.msra.mxu1 %v3835_v46 }
 0xcc0   : > { %v2372_v11 = vpop.f32.mrb[20].mxu1 }
 0xcc1   : > { %v2379_v12 = vadd.f32 %v2372_v11, %v2199_v53  ;;  %v3679_v13 = vpop.f32.mrb[21].mxu1  ;;  %v3427_v53 = vld [vmem:[%s937_s26] ss:$0 sm:$0xff]  ;;  %v3836_v11 = vld [vmem:[%s4134_s17 + $0x70] sm:$0xff]  }
 0xcc2   : > { %v2375_v15 = vpop.f32.mrb[22].mxu1  ;;  %3584 = vmatprep.subr.bf16.mxu1 %v3836_v11  ;;  %v3838_v13 = vld [vmem:[%s4134_s17 + $0x78] sm:$0xff]  }
 0xcc3   : > { %v2381_v19 = vadd.f32 %v2379_v12, %v4309_v16  ;;  %v2380_v20 = vadd.f32 %v2375_v15, %v2200_v60  ;;  %v3680_v38 = vpop.f32.mrb[23].mxu1  ;;  %v3837_v12 = vld [vmem:[%s4134_s17 + $0x30] sm:$0xff]   ;;  %v2445_v15 = vld [vmem:[%s4128_s4] sm:$0x3]  ;;  %s4717_s4 = sld [smem:[#allocation23_spill]] (!%p3454_p5) }
 0xcc4   : > { %3585 = vmatpush3.bf16.msra.mxu1 %v3837_v12 }
 0xcc5   : > { %v4476_v21 = vadd.f32 %v3425_v14, %v2381_v19  ;;  %v2382_v23 = vadd.f32 %v2380_v20, %v4311_v17  ;;  %3586 = vmatprep.subr.bf16.mxu1 %v3838_v13  ;;  %v2450_v19 = vrot.slane %v2445_v15, %v1569_v59  ;;  %v2454_v20 = vrot.slane %v2445_v15, %v1573_v61 }
 0xcc7   : > { %v4479_v24 = vadd.f32 %v3425_v14, %v2382_v23  ;;  %v2394_v8 = vsel %vm1512_vm1, %v4476_v21, 0.0  ;;  %v3839_v14 = vld [vmem:[%s4134_s17 + $0x38] sm:$0xff]  }
 0xcc8   : > { %2395 = vadd.xlane.f32.xlu0 %v2394_v8  ;;  %3587 = vmatpush3.bf16.msra.mxu1 %v3839_v14 }
 0xcc9   : > { %v2397_v25 = vsel %vm1512_vm1, %v4479_v24, 0.0 }
 0xccc   : > { %2398 = vadd.xlane.f32.xlu0 %v2397_v25 }
 0xd55   : > { %v2396_v26 = vpop.xlane.xlu0 %2395 }
 0xd56   : > { %v2400_v16 = vmul.f32 0.015625, %v2396_v26 }
 0xd58   : > { %v2402_v27 = vsub.f32 %v4476_v21, %v2400_v16 }
 0xd59   : > { %v2399_v28 = vpop.xlane.xlu0 %2398 }
 0xd5a   : > { %v2401_v17 = vmul.f32 0.015625, %v2399_v28  ;;  %v2404_v29 = vmul.f32 %v2402_v27, %v2402_v27 }
 0xd5c   : > { %v2403_v30 = vsub.f32 %v4479_v24, %v2401_v17  ;;  %v2406_v31 = vsel %vm1512_vm1, %v2404_v29, 0.0 }
 0xd5d   : > { %2407 = vadd.xlane.f32.xlu0 %v2406_v31 }
 0xd5e   : > { %v2405_v32 = vmul.f32 %v2403_v30, %v2403_v30 }
 0xd60   : > { %v2409_v33 = vsel %vm1512_vm1, %v2405_v32, 0.0 }
 0xd61   : > { %2410 = vadd.xlane.f32.xlu0 %v2409_v33 }
 0xdea   : > { %v2408_v42 = vpop.xlane.xlu0 %2407 }
 0xdeb   : > { %v2412_v44 = vmul.f32 0.015625, %v2408_v42 }
 0xded   : > { %v2414_v45 = vadd.f32 1e-12, %v2412_v44 }
 0xdee   : > { %v2411_v47 = vpop.xlane.xlu0 %2410 }
 0xdef   : > { %3876 = vrsqrt.f32 %v2414_v45  ;;  %v2413_v48 = vmul.f32 0.015625, %v2411_v47 }
 0xdf1   : > { %v2415_v18 = vadd.f32 1e-12, %v2413_v48 }
 0xdf3   : > { %3878 = vrsqrt.f32 %v2415_v18 }
 0xdf9   : > { %v3877_v49 = vpop.eup %3876 }
 0xdfa   : > { %v2418_v22 = vmul.f32 %v3877_v49, %v2402_v27 }
 0xdfc   : > { %v2426_v9 = vmul.f32 %v3426_v50, %v2418_v22 }
 0xdfd   : > { %v3879_v51 = vpop.eup %3878 }
 0xdfe   : > { %v2419_v52 = vmul.f32 %v3879_v51, %v2403_v30  ;;  %v2434_v55 = vadd.f32 %v3427_v53, %v2426_v9 }
 0xe00   : > { %v2427_v54 = vmul.f32 %v3426_v50, %v2419_v52 }
 0xe02   : > { %v2435_v60 = vadd.f32 %v3427_v53, %v2427_v54 }
 0xe04   : > { %v2436_v62 = vpack.c.bf16 %v2435_v60, %v2434_v55 }
 0xe06   : > { %3436 = vmatmul.mubr.msk.bf16.vlgmr.msra.gmra.mrb[28].mxu0 %vm1512_vm1, %v2436_v62 }
 0xed9   : > { %v2534_v38 = vpop.f32.mrb[28].mxu0 }
 0xeda   : > { %v4529_v23 = vadd.f32 %v2534_v38, %v2450_v19  ;;  %v2536_v8 = vpop.f32.mrb[29].mxu0 }
 0xedb   : > { %v4531_v25 = vadd.f32 %v2536_v8, %v2454_v20  ;;  %v2538_v26 = vpop.f32.mrb[30].mxu0 }
 0xedc   : > { %v4534_v16 = vmul.f32 0.70710677, %v4529_v23  ;;  %v4536_v27 = vadd.f32 %v2538_v26, %v2450_v19  ;;  %v2540_v28 = vpop.f32.mrb[31].mxu0 }
 0xedd   : > { %v4539_v17 = vmul.f32 0.70710677, %v4531_v25  ;;  %v4541_v59 = vadd.f32 %v2540_v28, %v2454_v20 }
 0xede   : > { %v2551_v58 = vand.u32 2147483647, %v4534_v16  ;;  %v4545_v61 = vmul.f32 0.70710677, %v4536_v27  ;;  %vm2631_vm4 = vcmp.ge.f32.partialorder %v4534_v16, 0.0 }
 0xedf   : > { %v2552_v29 = vand.u32 2147483647, %v4539_v17  ;;  %v4549_v30 = vmul.f32 0.70710677, %v4541_v59  ;;  %vm2632_vm5 = vcmp.ge.f32.partialorder %v4539_v17, 0.0 }
 0xee0   : > { %v2555_v31 = vmul.f32 0.3275911, %v2551_v58  ;;  %v2553_v32 = vand.u32 2147483647, %v4545_v61  ;;  %v2607_v56 = vsub.f32 0.0, %v2551_v58  ;;  %vm2633_vm6 = vcmp.ge.f32.partialorder %v4545_v61, 0.0 }
 0xee1   : > { %v2556_v33 = vmul.f32 0.3275911, %v2552_v29  ;;  %v2554_v34 = vand.u32 2147483647, %v4549_v30  ;;  %v2608_v42 = vsub.f32 0.0, %v2552_v29  ;;  %vm2634_vm7 = vcmp.ge.f32.partialorder %v4549_v30, 0.0 }
 0xee2   : > { %v2559_v35 = vadd.f32 1.0, %v2555_v31  ;;  %v2557_v36 = vmul.f32 0.3275911, %v2553_v32  ;;  %v2611_v45 = vmul.f32 %v2607_v56, %v2551_v58  ;;  %v2609_v47 = vsub.f32 0.0, %v2553_v32 }
 0xee3   : > { %v2560_v37 = vadd.f32 1.0, %v2556_v33  ;;  %v2558_v39 = vmul.f32 0.3275911, %v2554_v34  ;;  %v2612_v49 = vmul.f32 %v2608_v42, %v2552_v29  ;;  %v2610_v50 = vsub.f32 0.0, %v2554_v34 }
 0xee4   : > { %3880 = vrcp.f32 %v2559_v35  ;;  %v2561_v40 = vadd.f32 1.0, %v2557_v36  ;;  %v2615_v52 = vmul.f32 1.442695, %v2611_v45  ;;  %v2613_v54 = vmul.f32 %v2609_v47, %v2553_v32 }
 0xee5   : > { %3882 = vrcp.f32 %v2560_v37  ;;  %v2562_v41 = vadd.f32 1.0, %v2558_v39  ;;  %v2617_v60 = vmul.f32 1.442695, %v2612_v49  ;;  %v2614_v1 = vmul.f32 %v2610_v50, %v2554_v34 }
 0xee6   : > { %3884 = vrcp.f32 %v2561_v40  ;;  %v2619_v43 = vmul.f32 1.442695, %v2613_v54 }
 0xee7   : > { %3886 = vrcp.f32 %v2562_v41  ;;  %v2621_v11 = vmul.f32 1.442695, %v2614_v1 }
 0xee8   : > { %3888 = vpow2.f32 %v2615_v52 }
 0xee9   : > { %3890 = vpow2.f32 %v2617_v60 }
 0xeea   : > { %3892 = vpow2.f32 %v2619_v43  ;;  %v2546_v43 = vmul.f32 0.5, %v4541_v59 }
 0xeeb   : > { %3894 = vpow2.f32 %v2621_v11 }
 0xeee   : > { %v3881_v44 = vpop.eup %3880 }
 0xeef   : > { %v3883_v48 = vpop.eup %3882  ;;  %v2571_v18 = vmul.f32 1.0614054, %v3881_v44 }
 0xef0   : > { %v2572_v22 = vmul.f32 1.0614054, %v3883_v48  ;;  %v3885_v9 = vpop.eup %3884 }
 0xef1   : > { %v2575_v51 = vadd.f32 -1.4531521, %v2571_v18  ;;  %v2573_v62 = vmul.f32 1.0614054, %v3885_v9  ;;  %v3887_v63 = vpop.eup %3886 }
 0xef2   : > { %v2576_v53 = vadd.f32 -1.4531521, %v2572_v22  ;;  %v2574_v4 = vmul.f32 1.0614054, %v3887_v63  ;;  %v3889_v34 = vpop.eup %3888 }
 0xef3   : > { %v2579_v55 = vmul.f32 %v3881_v44, %v2575_v51  ;;  %v2577_v3 = vadd.f32 -1.4531521, %v2573_v62  ;;  %v3891_v36 = vpop.eup %3890 }
 0xef4   : > { %v2580_v0 = vmul.f32 %v3883_v48, %v2576_v53  ;;  %v2578_v10 = vadd.f32 -1.4531521, %v2574_v4  ;;  %v3893_v47 = vpop.eup %3892 }
 0xef5   : > { %v2583_v2 = vadd.f32 1.4214138, %v2579_v55  ;;  %v2581_v7 = vmul.f32 %v3885_v9, %v2577_v3  ;;  %v3895_v51 = vpop.eup %3894  ;;  %v2544_v3 = vmul.f32 0.5, %v4531_v25 }
 0xef6   : > { %v2584_v5 = vadd.f32 1.4214138, %v2580_v0  ;;  %v2582_v14 = vmul.f32 %v3887_v63, %v2578_v10 }
 0xef7   : > { %v2587_v6 = vmul.f32 %v3881_v44, %v2583_v2  ;;  %v2585_v13 = vadd.f32 1.4214138, %v2581_v7  ;;  %v2545_v2 = vmul.f32 0.5, %v4536_v27  ;;  %v3437_v27 = vld [vmem:[%s954_s16] ss:$0 sm:$0xff]  ;;  %s4712_s16 = sld [smem:[#allocation17_spill]] (!%p3454_p5) }
 0xef8   : > { %v2588_v46 = vmul.f32 %v3883_v48, %v2584_v5  ;;  %v2586_v38 = vadd.f32 1.4214138, %v2582_v14 }
 0xef9   : > { %v2591_v12 = vadd.f32 -0.28449672, %v2587_v6  ;;  %v2589_v20 = vmul.f32 %v3885_v9, %v2585_v13 }
 0xefa   : > { %v2592_v15 = vadd.f32 -0.28449672, %v2588_v46  ;;  %v2590_v58 = vmul.f32 %v3887_v63, %v2586_v38 }
 0xefb   : > { %v2595_v19 = vmul.f32 %v3881_v44, %v2591_v12  ;;  %v2593_v28 = vadd.f32 -0.28449672, %v2589_v20 }
 0xefc   : > { %v2596_v8 = vmul.f32 %v3883_v48, %v2592_v15  ;;  %v2594_v33 = vadd.f32 -0.28449672, %v2590_v58 }
 0xefd   : > { %v2599_v26 = vadd.f32 0.2548296, %v2595_v19  ;;  %v2597_v32 = vmul.f32 %v3885_v9, %v2593_v28 }
 0xefe   : > { %v2600_v29 = vadd.f32 0.2548296, %v2596_v8  ;;  %v2598_v40 = vmul.f32 %v3887_v63, %v2594_v33  ;;  %v3898_v33 = vld [vmem:[%s4654_s18 + $0x10] sm:$0xff] (!%p3454_p5)  }
 0xeff   : > { %v2603_v31 = vmul.f32 %v3881_v44, %v2599_v26  ;;  %v2601_v39 = vadd.f32 0.2548296, %v2597_v32  ;;  %v3897_v32 = vld [vmem:[%s4654_s18 + $0x8] sm:$0xff] (!%p3454_p5)  }
 0xf00   : > { %v2604_v35 = vmul.f32 %v3883_v48, %v2600_v29  ;;  %v2602_v45 = vadd.f32 0.2548296, %v2598_v40 }
 0xf01   : > { %v2623_v37 = vmul.f32 %v3889_v34, %v2603_v31  ;;  %v2605_v42 = vmul.f32 %v3885_v9, %v2601_v39  ;;  %v2543_v9 = vmul.f32 0.5, %v4529_v23  ;;  %v3931_v31 = vmov (!%p3454_p5), 0.0   ;;  %v3899_v34 = vld [vmem:[%s4654_s18 + $0x18] sm:$0xff] (!%p3454_p5)  }
 0xf02   : > { %v2624_v41 = vmul.f32 %v3891_v36, %v2604_v35  ;;  %v2606_v50 = vmul.f32 %v3887_v63, %v2602_v45  ;;  %3681 = vmatprep.subr.bf16.mxu0 (!%p3454_p5), %v3931_v31  ;;  %3689 = vmatprep.mubr.msk.bf16.mxu0 (!%p3454_p5), %vm3932_vm10, %v3931_v31  ;;  %v3900_v35 = vld [vmem:[%s4709_s21] sm:$0xff] (!%p3454_p5)   ;;  %v3901_v36 = vld [vmem:[%s4709_s21 + $0x8] sm:$0xff] (!%p3454_p5)  }
 0xf03   : > { %v2627_v56 = vsub.f32 1.0, %v2623_v37  ;;  %v2625_v22 = vmul.f32 %v3893_v47, %v2605_v42  ;;  %3693 = vmatprep.subr.bf16.mxu1 (!%p3454_p5), %v3931_v31  ;;  %v3456_v45 = vld [vmem:[%s4711_s2] ss:$0 sm:$0xff] (!%p3454_p5) }
 0xf04   : > { %v2628_v18 = vsub.f32 1.0, %v2624_v41  ;;  %v2626_v48 = vmul.f32 %v3895_v51, %v2606_v50  ;;  %v3903_v50 = vld [vmem:[%s4709_s21 + $0x18] sm:$0xff] (!%p3454_p5)   ;;  %v3457_v51 = vld [vmem:[%s4712_s16] ss:$0 sm:$0xff] (!%p3454_p5)  ;;  %s4718_s16 = sld [smem:[#allocation24_spill]] (!%p3454_p5) }
 0xf05   : > { %v2635_v49 = vsub.f32 0.0, %v2627_v56  ;;  %v2629_v53 = vsub.f32 1.0, %v2625_v22  ;;  %v3902_v22 = vld [vmem:[%s4709_s21 + $0x10] sm:$0xff] (!%p3454_p5)  }
 0xf06   : > { %v2636_v44 = vsub.f32 0.0, %v2628_v18  ;;  %v2630_v60 = vsub.f32 1.0, %v2626_v48 }
 0xf07   : > { %v2639_v52 = vsel %vm2631_vm4, %v2627_v56, %v2635_v49  ;;  %v2637_v55 = vsub.f32 0.0, %v2629_v53  ;;  %v3455_v56 = vld [vmem:[%s4710_s24] ss:$0 sm:$0xff] (!%p3454_p5) }
 0xf08   : > { %v2640_v54 = vsel %vm2632_vm5, %v2628_v18, %v2636_v44  ;;  %v2643_v62 = vadd.f32 1.0, %v2639_v52  ;;  %v2638_v1 = vsub.f32 0.0, %v2630_v60 }
 0xf09   : > { %v2641_v0 = vsel %vm2633_vm6, %v2629_v53, %v2637_v55  ;;  %v2644_v63 = vadd.f32 1.0, %v2640_v54 }
 0xf0a   : > { %v2645_v16 = vadd.f32 1.0, %v2641_v0  ;;  %v2642_v17 = vsel %vm2634_vm7, %v2630_v60, %v2638_v1  ;;  %v2647_v4 = vmul.f32 %v2643_v62, %v2543_v9  ;;  %v3904_v9 = vld [vmem:[%s4713_s6] sm:$0xff] (!%p3454_p5)   ;;  %v3905_v0 = vld [vmem:[%s4713_s6 + $0x8] sm:$0xff] (!%p3454_p5)  }
 0xf0b   : > { %v2646_v6 = vadd.f32 1.0, %v2642_v17  ;;  %v2648_v61 = vmul.f32 %v2644_v63, %v2544_v3  ;;  %v3463_v1 = vld [vmem:[%s4714_s22] ss:$0 sm:$0xff] (!%p3454_p5) }
 0xf0c   : > { %v2649_v5 = vmul.f32 %v2645_v16, %v2545_v2 }
 0xf0d   : > { %v2650_v23 = vmul.f32 %v2646_v6, %v2546_v43  ;;  %v3906_v6 = vld [vmem:[%s4715_s0] sm:$0xff] (!%p3454_p5)  }
 0xf0e   : > { %v2651_v7 = vpack.c.bf16 %v2649_v5, %v2647_v4 }
 0xf0f   : > { %v2652_v10 = vpack.c.bf16 %v2650_v23, %v2648_v61  ;;  %v3469_v61 = vld [vmem:[%s4716_s27] ss:$0 sm:$0xff] (!%p3454_p5) }
 0xf11   : > { %2820 = vmatprep.mubr.bf16.mxu1 %v2652_v10 }
 0xf12   : > { %2821 = vmatmul.mubr.bf16.vlgmr.msra.gmra.mrb[24].mxu1 %v2651_v7 }
 0xf13   : > { %3701 = vmatprep.mubr.msk.bf16.mxu1 (!%p3454_p5), %vm3932_vm10, %v3931_v31  ;;  %3694 = vmatpush3.bf16.msra.mxu1 (!%p3454_p5), %v3900_v35 }
 0xf14   : > { %3695 = vmatprep.subr.bf16.mxu1 (!%p3454_p5), %v3931_v31 }
 0xf17   : > { %3696 = vmatpush3.bf16.msra.mxu1 (!%p3454_p5), %v3901_v36 }
 0xf18   : > { %3697 = vmatprep.subr.bf16.mxu1 (!%p3454_p5), %v3931_v31 }
 0xf1b   : > { %3698 = vmatpush3.bf16.msra.mxu1 (!%p3454_p5), %v3902_v22 }
 0xf1c   : > { %3699 = vmatprep.subr.bf16.mxu1 (!%p3454_p5), %v3931_v31 }
 0xf1f   : > { %3700 = vmatpush3.bf16.msra.mxu1 (!%p3454_p5), %v3903_v50 }
 0xf20   : > { %3713 = vmatprep.subr.bf16.mxu1 (!%p3454_p5), %v3931_v31 }
 0xfe5   : > { %v3588_v46 = vpop.f32.mrb[24].mxu1 }
 0xfe6   : > { %v3589_v30 = vpop.f32.mrb[25].mxu1 }
 0xfe7   : > { %v3590_v25 = vadd.f32 %v3589_v30, %v3588_v46  ;;  %v3591_v11 = vpop.f32.mrb[26].mxu1 }
 0xfe8   : > { %v3592_v12 = vpop.f32.mrb[27].mxu1 }
 0xfe9   : > { %v2823_v13 = vadd.f32 %v3590_v25, %v3437_v27  ;;  %v3593_v14 = vadd.f32 %v3592_v12, %v3591_v11  ;;  %2836 = sbr.rel (%p3454_p5) target bundleno = 5298 (0x14b2), region = 132  ;;  %v3473_v12 = vld [vmem:[%s4717_s4] ss:$0 sm:$0xff] (!%p3454_p5) }
 0xfeb   : > { %v2829_v59 = vadd.f32 %v2823_v13, %v4476_v21  ;;  %v2826_v15 = vadd.f32 %v3593_v14, %v3437_v27 }
 0xfed   : > { %2831 = vst.msk [vmem:[#allocation2] sm:$0xff] %vm1512_vm1, %v2829_v59  ;;  %v2830_v19 = vadd.f32 %v2826_v15, %v4479_v24  ;;  %v3896_v24 = vld [vmem:[%s4654_s18] sm:$0xff] (!%p3454_p5)  }
 0xfee   : > { %3682 = vmatpush3.bf16.msra.mxu0 (!%p3454_p5), %v3896_v24 }
 0xfef   : > { %2832 = vst.msk [vmem:[#allocation2 + $0x8] sm:$0xff] %vm1512_vm1, %v2830_v19  ;;  %v2838_v20 = vrot.slane (!%p3454_p5), %v2830_v19, 7  ;;  %3683 = vmatprep.subr.bf16.mxu0 (!%p3454_p5), %v3931_v31 }
 0xff1   : > { %v2841_v38 = vsel %vm2840_vm8, %v2829_v59, %v2838_v20 }
 0xff2   : > { %v2845_v8 = vsel %vm2844_vm9, %v2841_v38, 0.0  ;;  %3684 = vmatpush3.bf16.msra.mxu0 %v3897_v32 }
 0xff3   : > { %2846 = vadd.xlane.f32.xlu0 %v2845_v8  ;;  %3685 = vmatprep.subr.bf16.mxu0 %v3931_v31 }
 0xff6   : > { %3686 = vmatpush3.bf16.msra.mxu0 %v3898_v33 }
 0xff7   : > { %3687 = vmatprep.subr.bf16.mxu0 %v3931_v31 }
 0xffa   : > { %3688 = vmatpush3.bf16.msra.mxu0 %v3899_v34 }
 0xffb   : > { %3705 = vmatprep.subr.bf16.mxu0 %v3931_v31 }
0x1080   : > { %v2847_v26 = vpop.xlane.xlu0 %2846 }
0x1081   : > { %v2848_v28 = vmul.f32 0.015625, %v2847_v26 }
0x1083   : > { %v2849_v58 = vsub.f32 %v2841_v38, %v2848_v28  ;;  %v3175_v28 = vand.u32 127, %v1567_v57 }
0x1085   : > { %v2850_v21 = vmul.f32 %v2849_v58, %v2849_v58  ;;  %vm3176_vm15 = vcmp.ge.s32.totalorder %v3175_v28, 8  ;;  %vm3177_vm0 = vcmp.lt.s32.totalorder %v3175_v28, 12 }
0x1087   : > { %v2851_v29 = vsel %vm2844_vm9, %v2850_v21, 0.0 }
0x1088   : > { %2852 = vadd.xlane.f32.xlu0 %v2851_v29 }
0x1115   : > { %v2853_v37 = vpop.xlane.xlu0 %2852 }
0x1116   : > { %v2854_v39 = vmul.f32 0.015625, %v2853_v37 }
0x1118   : > { %v2855_v40 = vadd.f32 1e-12, %v2854_v39 }
0x111a   : > { %3907 = vrsqrt.f32 %v2855_v40 }
0x1124   : > { %v3908_v41 = vpop.eup %3907 }
0x1125   : > { %v2857_v42 = vmul.f32 %v3908_v41, %v2849_v58 }
0x1127   : > { %v2864_v47 = vmul.f32 %v3455_v56, %v2857_v42 }
0x1129   : > { %v2871_v18 = vadd.f32 %v3456_v45, %v2864_v47 }
0x112b   : > { %v2872_v49 = vpack.c.bf16 %v2871_v18, %v2871_v18 }
0x112d   : > { %3690 = vmatmul.mubr.msk.bf16.vlgmr.msra.gmra.mrb[0].mxu0 %vm1512_vm1, %v2872_v49 }
0x112e   : > { %3709 = vmatprep.mubr.msk.bf16.mxu0 %vm3932_vm10, %v3931_v31  ;;  %3706 = vmatpush3.bf16.msra.mxu0 %v3904_v9 }
0x112f   : > { %3707 = vmatprep.subr.bf16.mxu0 %v3931_v31 }
0x1132   : > { %3708 = vmatpush3.bf16.msra.mxu0 %v3905_v0 }
0x1200   : > { %v2949_v44 = vpop.f32.mrb[0].mxu0 }
0x1201   : > { %v2950_v52 = vadd.f32 %v3457_v51, %v2949_v44  ;;  %v3691_v53 = vpop.f32.mrb[1].mxu0 }
0x1202   : > { %v2952_v48 = vpop.f32.mrb[2].mxu0 }
0x1203   : > { %vm2955_vm11 = vcmp.gt.f32.partialorder %v2950_v52, 0.0  ;;  %v2956_v54 = vmul.f32 0.01, %v2950_v52  ;;  %v3692_v55 = vpop.f32.mrb[3].mxu0 }
0x1205   : > { %v2957_v60 = vsel %vm2955_vm11, %v2950_v52, %v2956_v54 }
0x1206   : > { %v2958_v62 = vpack.c.bf16 %v2957_v60, %v2957_v60 }
0x1208   : > { %3702 = vmatmul.mubr.msk.bf16.vlgmr.msra.gmra.mrb[0].mxu1 %vm1512_vm1, %v2958_v62  ;;  %vm3178_vm1 = vmand %vm3176_vm15, %vm3177_vm0 }
0x1209   : > { %3715 = vmatprep.mubr.msk.bf16.mxu1 %vm3932_vm10, %v3931_v31  ;;  %3714 = vmatpush3.bf16.msra.mxu1 %v3906_v6 }
0x12db   : > { %v3035_v63 = vpop.f32.mrb[0].mxu1 }
0x12dc   : > { %v3036_v2 = vadd.f32 %v3463_v1, %v3035_v63  ;;  %v3703_v16 = vpop.f32.mrb[1].mxu1 }
0x12dd   : > { %v3038_v3 = vpop.f32.mrb[2].mxu1 }
0x12de   : > { %vm3041_vm12 = vcmp.gt.f32.partialorder %v3036_v2, 0.0  ;;  %v3042_v17 = vmul.f32 0.01, %v3036_v2  ;;  %v3704_v4 = vpop.f32.mrb[3].mxu1 }
0x12e0   : > { %v3043_v5 = vsel %vm3041_vm12, %v3036_v2, %v3042_v17 }
0x12e1   : > { %v3044_v43 = vpack.c.bf16 %v3043_v5, %v3043_v5 }
0x12e3   : > { %3710 = vmatmul.mubr.msk.bf16.vlgmr.msra.gmra.mrb[4].mxu0 %vm3068_vm13, %v3044_v43 }
0x13b6   : > { %v3106_v7 = vpop.f32.mrb[4].mxu0 }
0x13b7   : > { %v3107_v23 = vadd.f32 %v3469_v61, %v3106_v7  ;;  %v3711_v10 = vpop.f32.mrb[5].mxu0 }
0x13b8   : > { %v3109_v46 = vpop.f32.mrb[6].mxu0 }
0x13b9   : > { %vm3112_vm14 = vcmp.gt.f32.partialorder %v3107_v23, 0.0  ;;  %v3113_v27 = vmul.f32 0.01, %v3107_v23  ;;  %v3712_v30 = vpop.f32.mrb[7].mxu0 }
0x13bb   : > { %v3114_v25 = vsel %vm3112_vm14, %v3107_v23, %v3113_v27 }
0x13bc   : > { %v3115_v11 = vpack.c.bf16 %v3114_v25, %v3114_v25 }
0x13be   : > { %3716 = vmatmul.mubr.msk.bf16.vlgmr.msra.gmra.mrb[4].mxu1 %vm1668_vm3, %v3115_v11 }
0x1491   : > { %v3168_v13 = vpop.f32.mrb[4].mxu1 }
0x1492   : > { %v3169_v14 = vadd.f32 %v3473_v12, %v3168_v13  ;;  %v3717_v59 = vpop.f32.mrb[5].mxu1 }
0x1493   : > { %v3171_v15 = vpop.f32.mrb[6].mxu1 }
0x1494   : > { %v3179_v19 = vsub.f32 0.0, %v3169_v14  ;;  %v3718_v20 = vpop.f32.mrb[7].mxu1 }
0x1496   : > { %v3180_v38 = vmul.f32 1.442695, %v3179_v19 }
0x1498   : > { %3909 = vpow2.f32 %v3180_v38 }
0x14a2   : > { %v3910_v8 = vpop.eup %3909 }
0x14a3   : > { %v3182_v26 = vadd.f32 1.0, %v3910_v8 }
0x14a5   : > { %3911 = vrcp.f32 %v3182_v26 }
0x14af   : > { %v3912_v58 = vpop.eup %3911 }
0x14b0   : > { %v3185_v21 = vsel %vm3178_vm1, %v3912_v58, %v3169_v14 }
0x14b1   : > { %3186 = vst [vmem:[%s4718_s16] sm:$0x3] %v3185_v21 }
0x14b2 PF: > { %s4719_s5 = sld [smem:[#allocation3_spill]] }
0x14b8   : > { %s36_s27 = sadd.s32 1, %s4719_s5  }
0x14b9   : > { %p33_p6 = scmp.ge.s32.totalorder %s36_s27, 4  }
0x14bb   :  { %35 = sbr.rel (!%p33_p6) target bundleno = 22 (0x16), region = 191 }

</bundles_post_ra>
